<compile_context>
chip_gen: v6e
topology: v6e:2x2x1
jax: 0.10.0
libtpu: 0.0.40
codegen_flags: <defaults>
</compile_context>

<pallas_src>
import functools
import numpy as np
import jax
import jax.numpy as jnp
from jax.experimental import pallas as pl
from jax.experimental.pallas import tpu as pltpu


def _select_tiling():
    """Per-generation row-tile size and scoped-VMEM budget."""
    try:
        kind = jax.devices()[0].device_kind.lower()
    except Exception:  # pragma: no cover
        kind = ""
    if "v5" in kind:
        return 512, 64 * 1024 * 1024     # v5e: 128 MiB physical, 16 MiB scoped default
    if "v6" in kind:
        return 512, 96 * 1024 * 1024     # v6e: 128 MiB physical
    return 256, 32 * 1024 * 1024         # v7x / unknown: 64 MiB physical -> conservative


BLOCK_M, VMEM_LIMIT_BYTES = _select_tiling()


def _mosaic_params():
    return pltpu.CompilerParams(dimension_semantics=("parallel",),
                                vmem_limit_bytes=VMEM_LIMIT_BYTES)


# ----------------------------------------------------------------------------- kernels

def _qkv_kernel(x_ref, wq_ref, wkv_ref, q_ref, kv_ref):
    # Two outputs: q slab and kv slab (no post-hoc slicing in JAX).
    x = x_ref[...].astype(jnp.bfloat16)
    q_ref[...] = jnp.dot(x, wq_ref[...],
                         preferred_element_type=jnp.float32).astype(q_ref.dtype)
    kv_ref[...] = jnp.dot(x, wkv_ref[...],
                          preferred_element_type=jnp.float32).astype(kv_ref.dtype)


def pallas_qkv(x, wq, wkv):
    M, K = x.shape
    Hq = wq.shape[1]
    Hkv = wkv.shape[1]
    bm = M if M <= BLOCK_M else BLOCK_M
    return pl.pallas_call(
        _qkv_kernel,
        out_shape=(jax.ShapeDtypeStruct((M, Hq), jnp.bfloat16),
                   jax.ShapeDtypeStruct((M, Hkv), jnp.bfloat16)),
        grid=(pl.cdiv(M, bm),),
        in_specs=[pl.BlockSpec((bm, K), lambda i: (i, 0)),
                  pl.BlockSpec((K, Hq), lambda i: (0, 0)),     # weights VMEM-resident
                  pl.BlockSpec((K, Hkv), lambda i: (0, 0))],
        out_specs=(pl.BlockSpec((bm, Hq), lambda i: (i, 0)),
                   pl.BlockSpec((bm, Hkv), lambda i: (i, 0))),
        compiler_params=_mosaic_params(),
    )(x, wq, wkv)


def _linear_kernel(x_ref, w_ref, o_ref):
    # o = x @ w   (no bias -- QKV projections have none), bf16 operands, f32 acc.
    o_ref[...] = jnp.dot(x_ref[...].astype(jnp.bfloat16), w_ref[...],
                         preferred_element_type=jnp.float32).astype(o_ref.dtype)


def pallas_linear(x, w, out_dtype=jnp.bfloat16):
    M, K = x.shape
    _, N = w.shape
    bm = M if M <= BLOCK_M else BLOCK_M
    return pl.pallas_call(
        _linear_kernel,
        out_shape=jax.ShapeDtypeStruct((M, N), out_dtype),
        grid=(pl.cdiv(M, bm),),
        in_specs=[pl.BlockSpec((bm, K), lambda i: (i, 0)),
                  pl.BlockSpec((K, N), lambda i: (0, 0))],
        out_specs=pl.BlockSpec((bm, N), lambda i: (i, 0)),
        compiler_params=_mosaic_params(),
    )(x, w)


def _proj_res_ln_kernel(x_ref, res_ref, npad_ref, w_ref, b_ref, g_ref, beta_ref,
                        o_ref, *, eps):
    # o = LayerNorm(x @ W + b + residual) * gamma + beta, then * non_pad_mask (fused epilogue).
    z = jnp.dot(x_ref[...].astype(jnp.bfloat16), w_ref[...],
                preferred_element_type=jnp.float32)
    z = z + b_ref[...] + res_ref[...].astype(jnp.float32)
    mu = jnp.mean(z, axis=-1, keepdims=True)
    var = jnp.mean(jnp.square(z - mu), axis=-1, keepdims=True)
    y = (z - mu) * jax.lax.rsqrt(var + eps) * g_ref[...] + beta_ref[...]
    o_ref[...] = (y * npad_ref[...]).astype(o_ref.dtype)


def pallas_proj_residual_ln(x, residual, non_pad, w, b, gamma, beta, eps=1e-6):
    M, K = x.shape
    _, D = w.shape
    bm = M if M <= BLOCK_M else BLOCK_M
    return pl.pallas_call(
        functools.partial(_proj_res_ln_kernel, eps=eps),
        out_shape=jax.ShapeDtypeStruct((M, D), residual.dtype),
        grid=(pl.cdiv(M, bm),),
        in_specs=[pl.BlockSpec((bm, K), lambda i: (i, 0)),
                  pl.BlockSpec((bm, D), lambda i: (i, 0)),
                  pl.BlockSpec((bm, 1), lambda i: (i, 0)),
                  pl.BlockSpec((K, D), lambda i: (0, 0)),
                  pl.BlockSpec((1, D), lambda i: (0, 0)),
                  pl.BlockSpec((1, D), lambda i: (0, 0)),
                  pl.BlockSpec((1, D), lambda i: (0, 0))],
        out_specs=pl.BlockSpec((bm, D), lambda i: (i, 0)),
        compiler_params=_mosaic_params(),
    )(x, residual, non_pad, w, b.reshape(1, D), gamma.reshape(1, D), beta.reshape(1, D))


def _ffn_res_ln_kernel(x_ref, npad_ref, w1_ref, b1_ref, w2_ref, b2_ref, g_ref, beta_ref,
                       o_ref, *, eps):
    # o = (LayerNorm(relu(x@W1+b1) @ W2 + b2 + x) * gamma + beta) * non_pad_mask
    x = x_ref[...]
    h = jnp.dot(x.astype(jnp.bfloat16), w1_ref[...],
                preferred_element_type=jnp.float32) + b1_ref[...]
    h = jnp.maximum(h, 0.0)
    z = jnp.dot(h.astype(jnp.bfloat16), w2_ref[...],
                preferred_element_type=jnp.float32) + b2_ref[...]
    z = z + x.astype(jnp.float32)
    mu = jnp.mean(z, axis=-1, keepdims=True)
    var = jnp.mean(jnp.square(z - mu), axis=-1, keepdims=True)
    y = (z - mu) * jax.lax.rsqrt(var + eps) * g_ref[...] + beta_ref[...]
    o_ref[...] = (y * npad_ref[...]).astype(o_ref.dtype)


def pallas_ffn_residual_ln(x, non_pad, w1, b1, w2, b2, gamma, beta, eps=1e-6):
    # TODO(synk): tile d_inner with a second "arbitrary" grid axis + VMEM accumulator for
    #             d_inner >= 4096 on v7x (keeps fused epilogue within the 64 MiB VMEM).
    M, D = x.shape
    Din = w1.shape[1]
    bm = M if M <= BLOCK_M else BLOCK_M
    return pl.pallas_call(
        functools.partial(_ffn_res_ln_kernel, eps=eps),
        out_shape=jax.ShapeDtypeStruct((M, D), x.dtype),
        grid=(pl.cdiv(M, bm),),
        in_specs=[pl.BlockSpec((bm, D), lambda i: (i, 0)),
                  pl.BlockSpec((bm, 1), lambda i: (i, 0)),
                  pl.BlockSpec((D, Din), lambda i: (0, 0)),
                  pl.BlockSpec((1, Din), lambda i: (0, 0)),
                  pl.BlockSpec((Din, D), lambda i: (0, 0)),
                  pl.BlockSpec((1, D), lambda i: (0, 0)),
                  pl.BlockSpec((1, D), lambda i: (0, 0)),
                  pl.BlockSpec((1, D), lambda i: (0, 0))],
        out_specs=pl.BlockSpec((bm, D), lambda i: (i, 0)),
        compiler_params=_mosaic_params(),
    )(x, non_pad, w1, b1.reshape(1, Din), w2, b2.reshape(1, D),
      gamma.reshape(1, D), beta.reshape(1, D))


def _attn_kernel(q_ref, kv_ref, m_ref, o_ref, *, n_head, d_k, d_v, causal):
    # One grid step = one batch element, ALL heads (lane-dense in/out, no per-head DMA).
    #   q : (1, Lq, H*dk) bf16   kv : (1, Lk, H*dk + H*dv) bf16   m : (1, 1, Lk) additive pad mask
    # The 1/sqrt(d_k) scale is pre-folded into the Q projection weights.
    # TODO(synk): flash-style Lk streaming (online softmax) + head-major (B,H) grid for long seqs.
    q = q_ref[0]                       # (Lq, H*dk)
    kv = kv_ref[0]                     # (Lk, H*dk + H*dv)
    Lq = q.shape[0]
    Lk = kv.shape[0]

    # pad (+ causal) additive mask, computed once, one VPU add per head.
    mask_add = m_ref[0]                # (1, Lk) -> broadcasts over query rows
    if causal:
        row = jax.lax.broadcasted_iota(jnp.int32, (Lq, Lk), 0)
        col = jax.lax.broadcasted_iota(jnp.int32, (Lq, Lk), 1)
        mask_add = mask_add + jnp.where(col > row, -1e9, 0.0).astype(jnp.float32)

    v_off = n_head * d_k
    for h in range(n_head):
        qh = q[:, h * d_k:(h + 1) * d_k]                       # (Lq, dk)
        kh = kv[:, h * d_k:(h + 1) * d_k]                      # (Lk, dk)
        vh = kv[:, v_off + h * d_v: v_off + (h + 1) * d_v]     # (Lk, dv)
        # QK^T without forming an explicit transpose (contract last dims).
        s = jax.lax.dot_general(qh, kh, (((1,), (1,)), ((), ())),
                                preferred_element_type=jnp.float32)
        s = s + mask_add
        s = s - jnp.max(s, axis=-1, keepdims=True)
        p = jnp.exp(s)
        p = p * pl.reciprocal(jnp.sum(p, axis=-1, keepdims=True), approx=True)
        oh = jax.lax.dot_general(p.astype(vh.dtype), vh, (((1,), (0,)), ((), ())),
                                 preferred_element_type=jnp.float32)
        # Direct per-head store (no concatenate -> live set bounded to one head).
        o_ref[0, :, h * d_v:(h + 1) * d_v] = oh.astype(o_ref.dtype)


def pallas_attention(q, kv, pad_mask_add, *, n_head, d_k, d_v, causal):
    B, Lq, HDk = q.shape
    _, Lk, HDkv = kv.shape
    HDv = n_head * d_v
    return pl.pallas_call(
        functools.partial(_attn_kernel, n_head=n_head, d_k=d_k, d_v=d_v, causal=causal),
        out_shape=jax.ShapeDtypeStruct((B, Lq, HDv), jnp.bfloat16),
        grid=(B,),
        in_specs=[
            pl.BlockSpec((1, Lq, HDk), lambda b: (b, 0, 0)),
            pl.BlockSpec((1, Lk, HDkv), lambda b: (b, 0, 0)),
            pl.BlockSpec((1, 1, Lk), lambda b: (b, 0, 0)),   # pad mask reused across heads
        ],
        out_specs=pl.BlockSpec((1, Lq, HDv), lambda b: (b, 0, 0)),
        compiler_params=_mosaic_params(),
    )(q, kv, pad_mask_add)


# ----------------------------------------------------------------------------- model glue

def decoder_layer(x, enc_out, slf_pad_add, enc_pad_add, non_pad, p, n_head, d_k, d_v):
    B, Lt, D = x.shape
    _, Ls, _ = enc_out.shape
    Hk, Hv = n_head * d_k, n_head * d_v

    # ---- masked self-attention (one fused pass over x -> q, kv slabs) ----
    xm = x.reshape(B * Lt, D)
    q, kv = pallas_qkv(xm, p["slf"]["wq"], p["slf"]["wkv"])
    attn = pallas_attention(q.reshape(B, Lt, Hk), kv.reshape(B, Lt, Hk + Hv),
                            slf_pad_add, n_head=n_head, d_k=d_k, d_v=d_v, causal=True)
    xm = pallas_proj_residual_ln(attn.reshape(B * Lt, Hv), xm, non_pad,
                                 p["slf"]["wo"], p["slf"]["bo"],
                                 p["slf"]["ln_g"], p["slf"]["ln_b"])

    # ---- encoder-decoder attention (fused K|V GEMM on encoder output) ----
    q = pallas_linear(xm, p["enc"]["wq"]).reshape(B, Lt, Hk)
    kv = pallas_linear(enc_out.reshape(B * Ls, D), p["enc"]["wkv"]).reshape(B, Ls, Hk + Hv)
    attn = pallas_attention(q, kv, enc_pad_add, n_head=n_head, d_k=d_k, d_v=d_v, causal=False)
    xm = pallas_proj_residual_ln(attn.reshape(B * Lt, Hv), xm, non_pad,
                                 p["enc"]["wo"], p["enc"]["bo"],
                                 p["enc"]["ln_g"], p["enc"]["ln_b"])

    # ---- position-wise FFN fused with residual + LayerNorm + non_pad mask ----
    xm = pallas_ffn_residual_ln(xm, non_pad, p["ffn"]["w1"], p["ffn"]["b1"],
                                p["ffn"]["w2"], p["ffn"]["b2"],
                                p["ffn"]["ln_g"], p["ffn"]["ln_b"])
    return xm.reshape(B, Lt, D)


def sinusoid_table(n_pos, d_model):
    pos = np.arange(n_pos)[:, None].astype(np.float64)
    i = np.arange(d_model)[None, :]
    angle = pos / np.power(10000.0, 2.0 * (i // 2) / d_model)
    table = np.zeros((n_pos, d_model), np.float32)
    table[:, 0::2] = np.sin(angle[:, 0::2])
    table[:, 1::2] = np.cos(angle[:, 1::2])
    table[0, :] = 0.0  # PAD position
    return jnp.asarray(table)


def decoder_forward(params, tgt_seq, tgt_pos, src_seq, enc_output, n_head, d_k, d_v):
    B, Lt = tgt_seq.shape

    # embeddings (glue: table lookup)
    # TODO(synk): embedding gather stays in plain JAX (jnp.take); no Pallas gather kernel here.
    x = jnp.take(params["tgt_emb"], tgt_seq, axis=0) + jnp.take(params["pos_enc"], tgt_pos, axis=0)

    # additive key-pad masks, (B, 1, Lk) -- reused across heads via BlockSpec;
    # the causal (subsequent) mask is generated inside the attention kernel.
    slf_pad_add = jnp.where((tgt_seq == 0)[:, None, :], -1e9, 0.0).astype(jnp.float32)  # (B,1,Lt)
    enc_pad_add = jnp.where((src_seq == 0)[:, None, :], -1e9, 0.0).astype(jnp.float32)  # (B,1,Ls)
    # per-query-position non_pad mask, applied after each sublayer (matches reference).
    non_pad = (tgt_seq != 0).astype(jnp.float32).reshape(B * Lt, 1)

    for lp in params["layers"]:
        x = decoder_layer(x, enc_output, slf_pad_add, enc_pad_add, non_pad, lp,
                          n_head, d_k, d_v)
    return x


# ----------------------------------------------------------------------------- params

def init_params(key, *, n_layers, n_tgt_vocab, max_len, d_model, d_inner, n_head, d_k, d_v):
    keys = iter(jax.random.split(key, 4 + n_layers * 16))
    q_scale = 1.0 / float(np.sqrt(d_k))   # folded into the Q projection weights

    def nrm(shape, scale=0.02):
        return (scale * jax.random.normal(next(keys), shape)).astype(jnp.float32)

    def mha_params():
        wq = nrm((d_model, n_head * d_k)) * q_scale                 # scale pre-folded
        wk = nrm((d_model, n_head * d_k))
        wv = nrm((d_model, n_head * d_v))
        return {
            "wq": wq.astype(jnp.bfloat16),
            "wkv": jnp.concatenate([wk, wv], axis=1).astype(jnp.bfloat16),  # (D, H*dk + H*dv)
            "wo": nrm((n_head * d_v, d_model)).astype(jnp.bfloat16),
            "bo": jnp.zeros((d_model,), jnp.float32),
            "ln_g": jnp.ones((d_model,), jnp.float32),
            "ln_b": jnp.zeros((d_model,), jnp.float32),
        }

    layers = []
    for _ in range(n_layers):
        layers.append({
            "slf": mha_params(),
            "enc": mha_params(),
            "ffn": {
                "w1": nrm((d_model, d_inner)).astype(jnp.bfloat16),
                "b1": jnp.zeros((d_inner,), jnp.float32),
                "w2": nrm((d_inner, d_model)).astype(jnp.bfloat16),
                "b2": jnp.zeros((d_model,), jnp.float32),
                "ln_g": jnp.ones((d_model,), jnp.float32),
                "ln_b": jnp.zeros((d_model,), jnp.float32),
            },
        })
    return {
        "tgt_emb": nrm((n_tgt_vocab, d_model), scale=1.0).at[0].set(0.0),  # PAD row = 0
        "pos_enc": sinusoid_table(max_len + 1, d_model),
        "layers": layers,
    }


# ----------------------------------------------------------------------------- main

if __name__ == "__main__":
    B, Lt, Ls = 2, 8, 8
    d_model, d_inner, n_head, d_k, d_v = 32, 64, 4, 8, 8
    n_layers, n_tgt_vocab, max_len = 2, 50, 16

    key = jax.random.PRNGKey(0)
    k_par, k_tgt, k_src, k_enc = jax.random.split(key, 4)

    params = init_params(k_par, n_layers=n_layers, n_tgt_vocab=n_tgt_vocab, max_len=max_len,
                         d_model=d_model, d_inner=d_inner, n_head=n_head, d_k=d_k, d_v=d_v)

    tgt_seq = jax.random.randint(k_tgt, (B, Lt), 1, n_tgt_vocab)
    src_seq = jax.random.randint(k_src, (B, Ls), 1, n_tgt_vocab)
    # make last two target tokens of batch 1 PAD to exercise the padding / non-pad masks
    tgt_seq = tgt_seq.at[1, -2:].set(0)
    tgt_pos = jnp.where(tgt_seq != 0, jnp.arange(1, Lt + 1)[None, :], 0)
    enc_output = jax.random.normal(k_enc, (B, Ls, d_model), dtype=jnp.float32)

    fwd = jax.jit(functools.partial(decoder_forward, n_head=n_head, d_k=d_k, d_v=d_v))
    out = fwd(params, tgt_seq, tgt_pos, src_seq, enc_output)
    out = jax.block_until_ready(out)

    assert out.shape == (B, Lt, d_model) and out.dtype == jnp.float32
    assert bool(jnp.all(jnp.isfinite(out)))
    # padded target rows must be exactly zero (non_pad_mask applied after the last sublayer)
    assert bool(jnp.all(out[1, -2:, :] == 0.0))
    print("KERNEL_OK")
</pallas_src>

<mosaic_0001>
module attributes {stable_mosaic.version = 11 : i64} {
  func.func @_proj_res_ln_kernel(%arg0: i32, %arg1: memref<16x32xbf16, #tpu.memory_space<vmem>>, %arg2: memref<16x32xf32, #tpu.memory_space<vmem>>, %arg3: memref<16x1xf32, #tpu.memory_space<vmem>>, %arg4: memref<32x32xbf16, #tpu.memory_space<vmem>>, %arg5: memref<1x32xf32, #tpu.memory_space<vmem>>, %arg6: memref<1x32xf32, #tpu.memory_space<vmem>>, %arg7: memref<1x32xf32, #tpu.memory_space<vmem>>, %arg8: memref<16x32xf32, #tpu.memory_space<vmem>>) attributes {dimension_semantics = [#tpu.dimension_semantics<parallel>], iteration_bounds = array<i64: 1>, scalar_prefetch = 0 : i64, scratch_operands = 0 : i64, tpu.core_type = #tpu.core_type<tc>, window_params = [{transform_indices = @transform_0, window_bounds = array<i64: 16, 32>}, {transform_indices = @transform_1, window_bounds = array<i64: 16, 32>}, {transform_indices = @transform_2, window_bounds = array<i64: 16, 1>}, {pipeline_mode = #tpu.pipeline_mode<synchronous>, transform_indices = @transform_3, window_bounds = array<i64: 32, 32>}, {pipeline_mode = #tpu.pipeline_mode<synchronous>, transform_indices = @transform_4, window_bounds = array<i64: 1, 32>}, {pipeline_mode = #tpu.pipeline_mode<synchronous>, transform_indices = @transform_5, window_bounds = array<i64: 1, 32>}, {pipeline_mode = #tpu.pipeline_mode<synchronous>, transform_indices = @transform_6, window_bounds = array<i64: 1, 32>}, {transform_indices = @transform_7, window_bounds = array<i64: 16, 32>}]} {
    %c0 = arith.constant 0 : index
    %c0_0 = arith.constant 0 : index
    %0 = vector.load %arg1[%c0, %c0_0] : memref<16x32xbf16, #tpu.memory_space<vmem>>, vector<16x32xbf16>
    %c0_1 = arith.constant 0 : index
    %c0_2 = arith.constant 0 : index
    %1 = vector.load %arg4[%c0_1, %c0_2] : memref<32x32xbf16, #tpu.memory_space<vmem>>, vector<32x32xbf16>
    %cst = arith.constant dense<0.000000e+00> : vector<16x32xf32>
    %2 = tpu.matmul %0, %1, %cst {dimension_numbers = #tpu.dot_dimension_numbers<[1], [0], [0], [1], [0, 0, 1, 1], [], []>} : vector<16x32xbf16>, vector<32x32xbf16>, vector<16x32xf32> -> vector<16x32xf32>
    %c0_3 = arith.constant 0 : index
    %c0_4 = arith.constant 0 : index
    %3 = vector.load %arg5[%c0_3, %c0_4] : memref<1x32xf32, #tpu.memory_space<vmem>>, vector<1x32xf32>
    %4 = vector.broadcast %3 : vector<1x32xf32> to vector<16x32xf32>
    %5 = arith.addf %2, %4 : vector<16x32xf32>
    %c0_5 = arith.constant 0 : index
    %c0_6 = arith.constant 0 : index
    %6 = vector.load %arg2[%c0_5, %c0_6] : memref<16x32xf32, #tpu.memory_space<vmem>>, vector<16x32xf32>
    %7 = arith.addf %5, %6 : vector<16x32xf32>
    %cst_7 = arith.constant dense<0.000000e+00> : vector<16xf32>
    %8 = vector.multi_reduction <add>, %7, %cst_7 [1] : vector<16x32xf32> to vector<16xf32>
    %9 = vector.shape_cast %8 : vector<16xf32> to vector<16x1xf32>
    %cst_8 = arith.constant 3.200000e+01 : f32
    %10 = vector.broadcast %cst_8 : f32 to vector<16x1xf32>
    %11 = arith.divf %9, %10 : vector<16x1xf32>
    %12 = vector.broadcast %11 : vector<16x1xf32> to vector<16x32xf32>
    %13 = arith.subf %7, %12 : vector<16x32xf32>
    %14 = arith.mulf %13, %13 : vector<16x32xf32>
    %cst_9 = arith.constant dense<0.000000e+00> : vector<16xf32>
    %15 = vector.multi_reduction <add>, %14, %cst_9 [1] : vector<16x32xf32> to vector<16xf32>
    %16 = vector.shape_cast %15 : vector<16xf32> to vector<16x1xf32>
    %cst_10 = arith.constant 3.200000e+01 : f32
    %17 = vector.broadcast %cst_10 : f32 to vector<16x1xf32>
    %18 = arith.divf %16, %17 : vector<16x1xf32>
    %19 = vector.broadcast %11 : vector<16x1xf32> to vector<16x32xf32>
    %20 = arith.subf %7, %19 : vector<16x32xf32>
    %cst_11 = arith.constant 9.99999997E-7 : f32
    %21 = vector.broadcast %cst_11 : f32 to vector<16x1xf32>
    %22 = arith.addf %18, %21 : vector<16x1xf32>
    %23 = math.rsqrt %22 : vector<16x1xf32>
    %24 = vector.broadcast %23 : vector<16x1xf32> to vector<16x32xf32>
    %25 = arith.mulf %20, %24 : vector<16x32xf32>
    %c0_12 = arith.constant 0 : index
    %c0_13 = arith.constant 0 : index
    %26 = vector.load %arg6[%c0_12, %c0_13] : memref<1x32xf32, #tpu.memory_space<vmem>>, vector<1x32xf32>
    %27 = vector.broadcast %26 : vector<1x32xf32> to vector<16x32xf32>
    %28 = arith.mulf %25, %27 : vector<16x32xf32>
    %c0_14 = arith.constant 0 : index
    %c0_15 = arith.constant 0 : index
    %29 = vector.load %arg7[%c0_14, %c0_15] : memref<1x32xf32, #tpu.memory_space<vmem>>, vector<1x32xf32>
    %30 = vector.broadcast %29 : vector<1x32xf32> to vector<16x32xf32>
    %31 = arith.addf %28, %30 : vector<16x32xf32>
    %c0_16 = arith.constant 0 : index
    %c0_17 = arith.constant 0 : index
    %32 = vector.load %arg3[%c0_16, %c0_17] : memref<16x1xf32, #tpu.memory_space<vmem>>, vector<16x1xf32>
    %33 = vector.broadcast %32 : vector<16x1xf32> to vector<16x32xf32>
    %34 = arith.mulf %31, %33 : vector<16x32xf32>
    %c0_18 = arith.constant 0 : index
    %c0_19 = arith.constant 0 : index
    %35 = vector.load %arg8[%c0_18, %c0_19] : memref<16x32xf32, #tpu.memory_space<vmem>>, vector<16x32xf32>
    tpu.vector_store %arg8[%c0_18, %c0_19], %34 {strides = array<i32>} : memref<16x32xf32, #tpu.memory_space<vmem>>, vector<16x32xf32>,
    return
  }
  func.func @transform_0(%arg0: i32) -> (i32, i32) {
    %c0_i32 = arith.constant 0 : i32
    %c0_i32_0 = arith.constant 0 : i32
    return %arg0, %c0_i32 : i32, i32
  }
  func.func @transform_1(%arg0: i32) -> (i32, i32) {
    %c0_i32 = arith.constant 0 : i32
    %c0_i32_0 = arith.constant 0 : i32
    return %arg0, %c0_i32 : i32, i32
  }
  func.func @transform_2(%arg0: i32) -> (i32, i32) {
    %c0_i32 = arith.constant 0 : i32
    %c0_i32_0 = arith.constant 0 : i32
    return %arg0, %c0_i32 : i32, i32
  }
  func.func @transform_3(%arg0: i32) -> (i32, i32) {
    %c0_i32 = arith.constant 0 : i32
    %c0_i32_0 = arith.constant 0 : i32
    %c0_i32_1 = arith.constant 0 : i32
    return %c0_i32, %c0_i32_0 : i32, i32
  }
  func.func @transform_4(%arg0: i32) -> (i32, i32) {
    %c0_i32 = arith.constant 0 : i32
    %c0_i32_0 = arith.constant 0 : i32
    %c0_i32_1 = arith.constant 0 : i32
    return %c0_i32, %c0_i32_0 : i32, i32
  }
  func.func @transform_5(%arg0: i32) -> (i32, i32) {
    %c0_i32 = arith.constant 0 : i32
    %c0_i32_0 = arith.constant 0 : i32
    %c0_i32_1 = arith.constant 0 : i32
    return %c0_i32, %c0_i32_0 : i32, i32
  }
  func.func @transform_6(%arg0: i32) -> (i32, i32) {
    %c0_i32 = arith.constant 0 : i32
    %c0_i32_0 = arith.constant 0 : i32
    %c0_i32_1 = arith.constant 0 : i32
    return %c0_i32, %c0_i32_0 : i32, i32
  }
  func.func @transform_7(%arg0: i32) -> (i32, i32) {
    %c0_i32 = arith.constant 0 : i32
    %c0_i32_0 = arith.constant 0 : i32
    return %arg0, %c0_i32 : i32, i32
  }
}

module attributes {stable_mosaic.version = 11 : i64} {
  func.func @_attn_kernel(%arg0: i32, %arg1: memref<1x8x32xbf16, #tpu.memory_space<vmem>>, %arg2: memref<1x8x64xbf16, #tpu.memory_space<vmem>>, %arg3: memref<1x1x8xf32, #tpu.memory_space<vmem>>, %arg4: memref<1x8x32xbf16, #tpu.memory_space<vmem>>) attributes {dimension_semantics = [#tpu.dimension_semantics<parallel>], iteration_bounds = array<i64: 2>, scalar_prefetch = 0 : i64, scratch_operands = 0 : i64, tpu.core_type = #tpu.core_type<tc>, window_params = [{transform_indices = @transform_0, window_bounds = array<i64: 1, 8, 32>}, {transform_indices = @transform_1, window_bounds = array<i64: 1, 8, 64>}, {transform_indices = @transform_2, window_bounds = array<i64: 1, 1, 8>}, {transform_indices = @transform_3, window_bounds = array<i64: 1, 8, 32>}]} {
    %c0 = arith.constant 0 : index
    %c0_0 = arith.constant 0 : index
    %c0_1 = arith.constant 0 : index
    %0 = vector.load %arg1[%c0, %c0_0, %c0_1] : memref<1x8x32xbf16, #tpu.memory_space<vmem>>, vector<1x8x32xbf16>
    %1 = vector.shape_cast %0 : vector<1x8x32xbf16> to vector<8x32xbf16>
    %c0_2 = arith.constant 0 : index
    %c0_3 = arith.constant 0 : index
    %c0_4 = arith.constant 0 : index
    %2 = vector.load %arg2[%c0_2, %c0_3, %c0_4] : memref<1x8x64xbf16, #tpu.memory_space<vmem>>, vector<1x8x64xbf16>
    %3 = vector.shape_cast %2 : vector<1x8x64xbf16> to vector<8x64xbf16>
    %c0_5 = arith.constant 0 : index
    %c0_6 = arith.constant 0 : index
    %c0_7 = arith.constant 0 : index
    %4 = vector.load %arg3[%c0_5, %c0_6, %c0_7] : memref<1x1x8xf32, #tpu.memory_space<vmem>>, vector<1x1x8xf32>
    %5 = vector.shape_cast %4 : vector<1x1x8xf32> to vector<1x8xf32>
    %6 = tpu.iota {dimensions = array<i32: 0>} : vector<8x8xi32>
    %7 = tpu.iota {dimensions = array<i32: 1>} : vector<8x8xi32>
    %8 = arith.cmpi sgt, %7, %6 : vector<8x8xi32>
    %cst = arith.constant -1.000000e+09 : f32
    %cst_8 = arith.constant 0.000000e+00 : f32
    %9 = vector.broadcast %cst : f32 to vector<8x8xf32>
    %10 = vector.broadcast %cst_8 : f32 to vector<8x8xf32>
    %11 = arith.select %8, %9, %10 : vector<8x8xi1>, vector<8x8xf32>
    %12 = vector.broadcast %5 : vector<1x8xf32> to vector<8x8xf32>
    %13 = arith.addf %12, %11 : vector<8x8xf32>
    %14 = vector.extract_strided_slice %1 {offsets = [0, 0], sizes = [8, 8], strides = [1, 1]} : vector<8x32xbf16> to vector<8x8xbf16>
    %15 = vector.extract_strided_slice %3 {offsets = [0, 0], sizes = [8, 8], strides = [1, 1]} : vector<8x64xbf16> to vector<8x8xbf16>
    %16 = vector.extract_strided_slice %3 {offsets = [0, 32], sizes = [8, 8], strides = [1, 1]} : vector<8x64xbf16> to vector<8x8xbf16>
    %cst_9 = arith.constant dense<0.000000e+00> : vector<8x8xf32>
    %17 = tpu.matmul %14, %15, %cst_9 {dimension_numbers = #tpu.dot_dimension_numbers<[1], [1], [0], [0], [0, 0, 1, 0], [], []>} : vector<8x8xbf16>, vector<8x8xbf16>, vector<8x8xf32> -> vector<8x8xf32>
    %18 = arith.addf %17, %13 : vector<8x8xf32>
    %cst_10 = arith.constant dense<0xFF800000> : vector<8xf32>
    %19 = vector.multi_reduction <maximumf>, %18, %cst_10 [1] : vector<8x8xf32> to vector<8xf32>
    %20 = vector.shape_cast %19 : vector<8xf32> to vector<8x1xf32>
    %21 = vector.broadcast %20 : vector<8x1xf32> to vector<8x8xf32>
    %22 = arith.subf %18, %21 : vector<8x8xf32>
    %23 = math.exp %22 : vector<8x8xf32>
    %cst_11 = arith.constant dense<0.000000e+00> : vector<8xf32>
    %24 = vector.multi_reduction <add>, %23, %cst_11 [1] : vector<8x8xf32> to vector<8xf32>
    %25 = vector.shape_cast %24 : vector<8xf32> to vector<8x1xf32>
    %26 = tpu.reciprocal %25 {approx = true} : vector<8x1xf32> -> vector<8x1xf32>
    %27 = vector.broadcast %26 : vector<8x1xf32> to vector<8x8xf32>
    %28 = arith.mulf %23, %27 : vector<8x8xf32>
    %29 = arith.truncf %28 : vector<8x8xf32> to vector<8x8xbf16>
    %cst_12 = arith.constant dense<0.000000e+00> : vector<8x8xf32>
    %30 = tpu.matmul %29, %16, %cst_12 {dimension_numbers = #tpu.dot_dimension_numbers<[1], [0], [0], [1], [0, 0, 1, 1], [], []>} : vector<8x8xbf16>, vector<8x8xbf16>, vector<8x8xf32> -> vector<8x8xf32>
    %31 = arith.truncf %30 : vector<8x8xf32> to vector<8x8xbf16>
    %c0_13 = arith.constant 0 : index
    %c0_14 = arith.constant 0 : index
    %c0_15 = arith.constant 0 : index
    %32 = vector.load %arg4[%c0_13, %c0_14, %c0_15] : memref<1x8x32xbf16, #tpu.memory_space<vmem>>, vector<1x8x8xbf16>
    %33 = vector.shape_cast %32 : vector<1x8x8xbf16> to vector<8x8xbf16>
    %34 = vector.shape_cast %31 : vector<8x8xbf16> to vector<1x8x8xbf16>
    tpu.vector_store %arg4[%c0_13, %c0_14, %c0_15], %34 {strides = array<i32>} : memref<1x8x32xbf16, #tpu.memory_space<vmem>>, vector<1x8x8xbf16>,
    %35 = vector.extract_strided_slice %1 {offsets = [0, 8], sizes = [8, 8], strides = [1, 1]} : vector<8x32xbf16> to vector<8x8xbf16>
    %36 = vector.extract_strided_slice %3 {offsets = [0, 8], sizes = [8, 8], strides = [1, 1]} : vector<8x64xbf16> to vector<8x8xbf16>
    %37 = vector.extract_strided_slice %3 {offsets = [0, 40], sizes = [8, 8], strides = [1, 1]} : vector<8x64xbf16> to vector<8x8xbf16>
    %cst_16 = arith.constant dense<0.000000e+00> : vector<8x8xf32>
    %38 = tpu.matmul %35, %36, %cst_16 {dimension_numbers = #tpu.dot_dimension_numbers<[1], [1], [0], [0], [0, 0, 1, 0], [], []>} : vector<8x8xbf16>, vector<8x8xbf16>, vector<8x8xf32> -> vector<8x8xf32>
    %39 = arith.addf %38, %13 : vector<8x8xf32>
    %cst_17 = arith.constant dense<0xFF800000> : vector<8xf32>
    %40 = vector.multi_reduction <maximumf>, %39, %cst_17 [1] : vector<8x8xf32> to vector<8xf32>
    %41 = vector.shape_cast %40 : vector<8xf32> to vector<8x1xf32>
    %42 = vector.broadcast %41 : vector<8x1xf32> to vector<8x8xf32>
    %43 = arith.subf %39, %42 : vector<8x8xf32>
    %44 = math.exp %43 : vector<8x8xf32>
    %cst_18 = arith.constant dense<0.000000e+00> : vector<8xf32>
    %45 = vector.multi_reduction <add>, %44, %cst_18 [1] : vector<8x8xf32> to vector<8xf32>
    %46 = vector.shape_cast %45 : vector<8xf32> to vector<8x1xf32>
    %47 = tpu.reciprocal %46 {approx = true} : vector<8x1xf32> -> vector<8x1xf32>
    %48 = vector.broadcast %47 : vector<8x1xf32> to vector<8x8xf32>
    %49 = arith.mulf %44, %48 : vector<8x8xf32>
    %50 = arith.truncf %49 : vector<8x8xf32> to vector<8x8xbf16>
    %cst_19 = arith.constant dense<0.000000e+00> : vector<8x8xf32>
    %51 = tpu.matmul %50, %37, %cst_19 {dimension_numbers = #tpu.dot_dimension_numbers<[1], [0], [0], [1], [0, 0, 1, 1], [], []>} : vector<8x8xbf16>, vector<8x8xbf16>, vector<8x8xf32> -> vector<8x8xf32>
    %52 = arith.truncf %51 : vector<8x8xf32> to vector<8x8xbf16>
    %c0_20 = arith.constant 0 : index
    %c0_21 = arith.constant 0 : index
    %c8 = arith.constant 8 : index
    %53 = vector.load %arg4[%c0_20, %c0_21, %c8] : memref<1x8x32xbf16, #tpu.memory_space<vmem>>, vector<1x8x8xbf16>
    %54 = vector.shape_cast %53 : vector<1x8x8xbf16> to vector<8x8xbf16>
    %55 = vector.shape_cast %52 : vector<8x8xbf16> to vector<1x8x8xbf16>
    tpu.vector_store %arg4[%c0_20, %c0_21, %c8], %55 {strides = array<i32>} : memref<1x8x32xbf16, #tpu.memory_space<vmem>>, vector<1x8x8xbf16>,
    %56 = vector.extract_strided_slice %1 {offsets = [0, 16], sizes = [8, 8], strides = [1, 1]} : vector<8x32xbf16> to vector<8x8xbf16>
    %57 = vector.extract_strided_slice %3 {offsets = [0, 16], sizes = [8, 8], strides = [1, 1]} : vector<8x64xbf16> to vector<8x8xbf16>
    %58 = vector.extract_strided_slice %3 {offsets = [0, 48], sizes = [8, 8], strides = [1, 1]} : vector<8x64xbf16> to vector<8x8xbf16>
    %cst_22 = arith.constant dense<0.000000e+00> : vector<8x8xf32>
    %59 = tpu.matmul %56, %57, %cst_22 {dimension_numbers = #tpu.dot_dimension_numbers<[1], [1], [0], [0], [0, 0, 1, 0], [], []>} : vector<8x8xbf16>, vector<8x8xbf16>, vector<8x8xf32> -> vector<8x8xf32>
    %60 = arith.addf %59, %13 : vector<8x8xf32>
    %cst_23 = arith.constant dense<0xFF800000> : vector<8xf32>
    %61 = vector.multi_reduction <maximumf>, %60, %cst_23 [1] : vector<8x8xf32> to vector<8xf32>
    %62 = vector.shape_cast %61 : vector<8xf32> to vector<8x1xf32>
    %63 = vector.broadcast %62 : vector<8x1xf32> to vector<8x8xf32>
    %64 = arith.subf %60, %63 : vector<8x8xf32>
    %65 = math.exp %64 : vector<8x8xf32>
    %cst_24 = arith.constant dense<0.000000e+00> : vector<8xf32>
    %66 = vector.multi_reduction <add>, %65, %cst_24 [1] : vector<8x8xf32> to vector<8xf32>
    %67 = vector.shape_cast %66 : vector<8xf32> to vector<8x1xf32>
    %68 = tpu.reciprocal %67 {approx = true} : vector<8x1xf32> -> vector<8x1xf32>
    %69 = vector.broadcast %68 : vector<8x1xf32> to vector<8x8xf32>
    %70 = arith.mulf %65, %69 : vector<8x8xf32>
    %71 = arith.truncf %70 : vector<8x8xf32> to vector<8x8xbf16>
    %cst_25 = arith.constant dense<0.000000e+00> : vector<8x8xf32>
    %72 = tpu.matmul %71, %58, %cst_25 {dimension_numbers = #tpu.dot_dimension_numbers<[1], [0], [0], [1], [0, 0, 1, 1], [], []>} : vector<8x8xbf16>, vector<8x8xbf16>, vector<8x8xf32> -> vector<8x8xf32>
    %73 = arith.truncf %72 : vector<8x8xf32> to vector<8x8xbf16>
    %c0_26 = arith.constant 0 : index
    %c0_27 = arith.constant 0 : index
    %c16 = arith.constant 16 : index
    %74 = vector.load %arg4[%c0_26, %c0_27, %c16] : memref<1x8x32xbf16, #tpu.memory_space<vmem>>, vector<1x8x8xbf16>
    %75 = vector.shape_cast %74 : vector<1x8x8xbf16> to vector<8x8xbf16>
    %76 = vector.shape_cast %73 : vector<8x8xbf16> to vector<1x8x8xbf16>
    tpu.vector_store %arg4[%c0_26, %c0_27, %c16], %76 {strides = array<i32>} : memref<1x8x32xbf16, #tpu.memory_space<vmem>>, vector<1x8x8xbf16>,
    %77 = vector.extract_strided_slice %1 {offsets = [0, 24], sizes = [8, 8], strides = [1, 1]} : vector<8x32xbf16> to vector<8x8xbf16>
    %78 = vector.extract_strided_slice %3 {offsets = [0, 24], sizes = [8, 8], strides = [1, 1]} : vector<8x64xbf16> to vector<8x8xbf16>
    %79 = vector.extract_strided_slice %3 {offsets = [0, 56], sizes = [8, 8], strides = [1, 1]} : vector<8x64xbf16> to vector<8x8xbf16>
    %cst_28 = arith.constant dense<0.000000e+00> : vector<8x8xf32>
    %80 = tpu.matmul %77, %78, %cst_28 {dimension_numbers = #tpu.dot_dimension_numbers<[1], [1], [0], [0], [0, 0, 1, 0], [], []>} : vector<8x8xbf16>, vector<8x8xbf16>, vector<8x8xf32> -> vector<8x8xf32>
    %81 = arith.addf %80, %13 : vector<8x8xf32>
    %cst_29 = arith.constant dense<0xFF800000> : vector<8xf32>
    %82 = vector.multi_reduction <maximumf>, %81, %cst_29 [1] : vector<8x8xf32> to vector<8xf32>
    %83 = vector.shape_cast %82 : vector<8xf32> to vector<8x1xf32>
    %84 = vector.broadcast %83 : vector<8x1xf32> to vector<8x8xf32>
    %85 = arith.subf %81, %84 : vector<8x8xf32>
    %86 = math.exp %85 : vector<8x8xf32>
    %cst_30 = arith.constant dense<0.000000e+00> : vector<8xf32>
    %87 = vector.multi_reduction <add>, %86, %cst_30 [1] : vector<8x8xf32> to vector<8xf32>
    %88 = vector.shape_cast %87 : vector<8xf32> to vector<8x1xf32>
    %89 = tpu.reciprocal %88 {approx = true} : vector<8x1xf32> -> vector<8x1xf32>
    %90 = vector.broadcast %89 : vector<8x1xf32> to vector<8x8xf32>
    %91 = arith.mulf %86, %90 : vector<8x8xf32>
    %92 = arith.truncf %91 : vector<8x8xf32> to vector<8x8xbf16>
    %cst_31 = arith.constant dense<0.000000e+00> : vector<8x8xf32>
    %93 = tpu.matmul %92, %79, %cst_31 {dimension_numbers = #tpu.dot_dimension_numbers<[1], [0], [0], [1], [0, 0, 1, 1], [], []>} : vector<8x8xbf16>, vector<8x8xbf16>, vector<8x8xf32> -> vector<8x8xf32>
    %94 = arith.truncf %93 : vector<8x8xf32> to vector<8x8xbf16>
    %c0_32 = arith.constant 0 : index
    %c0_33 = arith.constant 0 : index
    %c24 = arith.constant 24 : index
    %95 = vector.load %arg4[%c0_32, %c0_33, %c24] : memref<1x8x32xbf16, #tpu.memory_space<vmem>>, vector<1x8x8xbf16>
    %96 = vector.shape_cast %95 : vector<1x8x8xbf16> to vector<8x8xbf16>
    %97 = vector.shape_cast %94 : vector<8x8xbf16> to vector<1x8x8xbf16>
    tpu.vector_store %arg4[%c0_32, %c0_33, %c24], %97 {strides = array<i32>} : memref<1x8x32xbf16, #tpu.memory_space<vmem>>, vector<1x8x8xbf16>,
    return
  }
  func.func @transform_0(%arg0: i32) -> (i32, i32, i32) {
    %c0_i32 = arith.constant 0 : i32
    %c0_i32_0 = arith.constant 0 : i32
    %c0_i32_1 = arith.constant 0 : i32
    return %arg0, %c0_i32, %c0_i32_0 : i32, i32, i32
  }
  func.func @transform_1(%arg0: i32) -> (i32, i32, i32) {
    %c0_i32 = arith.constant 0 : i32
    %c0_i32_0 = arith.constant 0 : i32
    %c0_i32_1 = arith.constant 0 : i32
    return %arg0, %c0_i32, %c0_i32_0 : i32, i32, i32
  }
  func.func @transform_2(%arg0: i32) -> (i32, i32, i32) {
    %c0_i32 = arith.constant 0 : i32
    %c0_i32_0 = arith.constant 0 : i32
    %c0_i32_1 = arith.constant 0 : i32
    return %arg0, %c0_i32, %c0_i32_0 : i32, i32, i32
  }
  func.func @transform_3(%arg0: i32) -> (i32, i32, i32) {
    %c0_i32 = arith.constant 0 : i32
    %c0_i32_0 = arith.constant 0 : i32
    %c0_i32_1 = arith.constant 0 : i32
    return %arg0, %c0_i32, %c0_i32_0 : i32, i32, i32
  }
}

module attributes {stable_mosaic.version = 11 : i64} {
  func.func @_qkv_kernel(%arg0: i32, %arg1: memref<16x32xf32, #tpu.memory_space<vmem>>, %arg2: memref<32x32xbf16, #tpu.memory_space<vmem>>, %arg3: memref<32x64xbf16, #tpu.memory_space<vmem>>, %arg4: memref<16x32xbf16, #tpu.memory_space<vmem>>, %arg5: memref<16x64xbf16, #tpu.memory_space<vmem>>) attributes {dimension_semantics = [#tpu.dimension_semantics<parallel>], iteration_bounds = array<i64: 1>, scalar_prefetch = 0 : i64, scratch_operands = 0 : i64, tpu.core_type = #tpu.core_type<tc>, window_params = [{transform_indices = @transform_0, window_bounds = array<i64: 16, 32>}, {pipeline_mode = #tpu.pipeline_mode<synchronous>, transform_indices = @transform_1, window_bounds = array<i64: 32, 32>}, {pipeline_mode = #tpu.pipeline_mode<synchronous>, transform_indices = @transform_2, window_bounds = array<i64: 32, 64>}, {transform_indices = @transform_3, window_bounds = array<i64: 16, 32>}, {transform_indices = @transform_4, window_bounds = array<i64: 16, 64>}]} {
    %c0 = arith.constant 0 : index
    %c0_0 = arith.constant 0 : index
    %0 = vector.load %arg1[%c0, %c0_0] : memref<16x32xf32, #tpu.memory_space<vmem>>, vector<16x32xf32>
    %1 = arith.truncf %0 : vector<16x32xf32> to vector<16x32xbf16>
    %c0_1 = arith.constant 0 : index
    %c0_2 = arith.constant 0 : index
    %2 = vector.load %arg2[%c0_1, %c0_2] : memref<32x32xbf16, #tpu.memory_space<vmem>>, vector<32x32xbf16>
    %cst = arith.constant dense<0.000000e+00> : vector<16x32xf32>
    %3 = tpu.matmul %1, %2, %cst {dimension_numbers = #tpu.dot_dimension_numbers<[1], [0], [0], [1], [0, 0, 1, 1], [], []>} : vector<16x32xbf16>, vector<32x32xbf16>, vector<16x32xf32> -> vector<16x32xf32>
    %4 = arith.truncf %3 : vector<16x32xf32> to vector<16x32xbf16>
    %c0_3 = arith.constant 0 : index
    %c0_4 = arith.constant 0 : index
    %5 = vector.load %arg4[%c0_3, %c0_4] : memref<16x32xbf16, #tpu.memory_space<vmem>>, vector<16x32xbf16>
    tpu.vector_store %arg4[%c0_3, %c0_4], %4 {strides = array<i32>} : memref<16x32xbf16, #tpu.memory_space<vmem>>, vector<16x32xbf16>,
    %c0_5 = arith.constant 0 : index
    %c0_6 = arith.constant 0 : index
    %6 = vector.load %arg3[%c0_5, %c0_6] : memref<32x64xbf16, #tpu.memory_space<vmem>>, vector<32x64xbf16>
    %cst_7 = arith.constant dense<0.000000e+00> : vector<16x64xf32>
    %7 = tpu.matmul %1, %6, %cst_7 {dimension_numbers = #tpu.dot_dimension_numbers<[1], [0], [0], [1], [0, 0, 1, 1], [], []>} : vector<16x32xbf16>, vector<32x64xbf16>, vector<16x64xf32> -> vector<16x64xf32>
    %8 = arith.truncf %7 : vector<16x64xf32> to vector<16x64xbf16>
    %c0_8 = arith.constant 0 : index
    %c0_9 = arith.constant 0 : index
    %9 = vector.load %arg5[%c0_8, %c0_9] : memref<16x64xbf16, #tpu.memory_space<vmem>>, vector<16x64xbf16>
    tpu.vector_store %arg5[%c0_8, %c0_9], %8 {strides = array<i32>} : memref<16x64xbf16, #tpu.memory_space<vmem>>, vector<16x64xbf16>,
    return
  }
  func.func @transform_0(%arg0: i32) -> (i32, i32) {
    %c0_i32 = arith.constant 0 : i32
    %c0_i32_0 = arith.constant 0 : i32
    return %arg0, %c0_i32 : i32, i32
  }
  func.func @transform_1(%arg0: i32) -> (i32, i32) {
    %c0_i32 = arith.constant 0 : i32
    %c0_i32_0 = arith.constant 0 : i32
    %c0_i32_1 = arith.constant 0 : i32
    return %c0_i32, %c0_i32_0 : i32, i32
  }
  func.func @transform_2(%arg0: i32) -> (i32, i32) {
    %c0_i32 = arith.constant 0 : i32
    %c0_i32_0 = arith.constant 0 : i32
    %c0_i32_1 = arith.constant 0 : i32
    return %c0_i32, %c0_i32_0 : i32, i32
  }
  func.func @transform_3(%arg0: i32) -> (i32, i32) {
    %c0_i32 = arith.constant 0 : i32
    %c0_i32_0 = arith.constant 0 : i32
    return %arg0, %c0_i32 : i32, i32
  }
  func.func @transform_4(%arg0: i32) -> (i32, i32) {
    %c0_i32 = arith.constant 0 : i32
    %c0_i32_0 = arith.constant 0 : i32
    return %arg0, %c0_i32 : i32, i32
  }
}

module attributes {stable_mosaic.version = 11 : i64} {
  func.func @_linear_kernel(%arg0: i32, %arg1: memref<16x32xf32, #tpu.memory_space<vmem>>, %arg2: memref<32x32xbf16, #tpu.memory_space<vmem>>, %arg3: memref<16x32xbf16, #tpu.memory_space<vmem>>) attributes {dimension_semantics = [#tpu.dimension_semantics<parallel>], iteration_bounds = array<i64: 1>, scalar_prefetch = 0 : i64, scratch_operands = 0 : i64, tpu.core_type = #tpu.core_type<tc>, window_params = [{transform_indices = @transform_0, window_bounds = array<i64: 16, 32>}, {pipeline_mode = #tpu.pipeline_mode<synchronous>, transform_indices = @transform_1, window_bounds = array<i64: 32, 32>}, {transform_indices = @transform_2, window_bounds = array<i64: 16, 32>}]} {
    %c0 = arith.constant 0 : index
    %c0_0 = arith.constant 0 : index
    %0 = vector.load %arg1[%c0, %c0_0] : memref<16x32xf32, #tpu.memory_space<vmem>>, vector<16x32xf32>
    %1 = arith.truncf %0 : vector<16x32xf32> to vector<16x32xbf16>
    %c0_1 = arith.constant 0 : index
    %c0_2 = arith.constant 0 : index
    %2 = vector.load %arg2[%c0_1, %c0_2] : memref<32x32xbf16, #tpu.memory_space<vmem>>, vector<32x32xbf16>
    %cst = arith.constant dense<0.000000e+00> : vector<16x32xf32>
    %3 = tpu.matmul %1, %2, %cst {dimension_numbers = #tpu.dot_dimension_numbers<[1], [0], [0], [1], [0, 0, 1, 1], [], []>} : vector<16x32xbf16>, vector<32x32xbf16>, vector<16x32xf32> -> vector<16x32xf32>
    %4 = arith.truncf %3 : vector<16x32xf32> to vector<16x32xbf16>
    %c0_3 = arith.constant 0 : index
    %c0_4 = arith.constant 0 : index
    %5 = vector.load %arg3[%c0_3, %c0_4] : memref<16x32xbf16, #tpu.memory_space<vmem>>, vector<16x32xbf16>
    tpu.vector_store %arg3[%c0_3, %c0_4], %4 {strides = array<i32>} : memref<16x32xbf16, #tpu.memory_space<vmem>>, vector<16x32xbf16>,
    return
  }
  func.func @transform_0(%arg0: i32) -> (i32, i32) {
    %c0_i32 = arith.constant 0 : i32
    %c0_i32_0 = arith.constant 0 : i32
    return %arg0, %c0_i32 : i32, i32
  }
  func.func @transform_1(%arg0: i32) -> (i32, i32) {
    %c0_i32 = arith.constant 0 : i32
    %c0_i32_0 = arith.constant 0 : i32
    %c0_i32_1 = arith.constant 0 : i32
    return %c0_i32, %c0_i32_0 : i32, i32
  }
  func.func @transform_2(%arg0: i32) -> (i32, i32) {
    %c0_i32 = arith.constant 0 : i32
    %c0_i32_0 = arith.constant 0 : i32
    return %arg0, %c0_i32 : i32, i32
  }
}

module attributes {stable_mosaic.version = 11 : i64} {
  func.func @_linear_kernel(%arg0: i32, %arg1: memref<16x32xf32, #tpu.memory_space<vmem>>, %arg2: memref<32x64xbf16, #tpu.memory_space<vmem>>, %arg3: memref<16x64xbf16, #tpu.memory_space<vmem>>) attributes {dimension_semantics = [#tpu.dimension_semantics<parallel>], iteration_bounds = array<i64: 1>, scalar_prefetch = 0 : i64, scratch_operands = 0 : i64, tpu.core_type = #tpu.core_type<tc>, window_params = [{transform_indices = @transform_0, window_bounds = array<i64: 16, 32>}, {pipeline_mode = #tpu.pipeline_mode<synchronous>, transform_indices = @transform_1, window_bounds = array<i64: 32, 64>}, {transform_indices = @transform_2, window_bounds = array<i64: 16, 64>}]} {
    %c0 = arith.constant 0 : index
    %c0_0 = arith.constant 0 : index
    %0 = vector.load %arg1[%c0, %c0_0] : memref<16x32xf32, #tpu.memory_space<vmem>>, vector<16x32xf32>
    %1 = arith.truncf %0 : vector<16x32xf32> to vector<16x32xbf16>
    %c0_1 = arith.constant 0 : index
    %c0_2 = arith.constant 0 : index
    %2 = vector.load %arg2[%c0_1, %c0_2] : memref<32x64xbf16, #tpu.memory_space<vmem>>, vector<32x64xbf16>
    %cst = arith.constant dense<0.000000e+00> : vector<16x64xf32>
    %3 = tpu.matmul %1, %2, %cst {dimension_numbers = #tpu.dot_dimension_numbers<[1], [0], [0], [1], [0, 0, 1, 1], [], []>} : vector<16x32xbf16>, vector<32x64xbf16>, vector<16x64xf32> -> vector<16x64xf32>
    %4 = arith.truncf %3 : vector<16x64xf32> to vector<16x64xbf16>
    %c0_3 = arith.constant 0 : index
    %c0_4 = arith.constant 0 : index
    %5 = vector.load %arg3[%c0_3, %c0_4] : memref<16x64xbf16, #tpu.memory_space<vmem>>, vector<16x64xbf16>
    tpu.vector_store %arg3[%c0_3, %c0_4], %4 {strides = array<i32>} : memref<16x64xbf16, #tpu.memory_space<vmem>>, vector<16x64xbf16>,
    return
  }
  func.func @transform_0(%arg0: i32) -> (i32, i32) {
    %c0_i32 = arith.constant 0 : i32
    %c0_i32_0 = arith.constant 0 : i32
    return %arg0, %c0_i32 : i32, i32
  }
  func.func @transform_1(%arg0: i32) -> (i32, i32) {
    %c0_i32 = arith.constant 0 : i32
    %c0_i32_0 = arith.constant 0 : i32
    %c0_i32_1 = arith.constant 0 : i32
    return %c0_i32, %c0_i32_0 : i32, i32
  }
  func.func @transform_2(%arg0: i32) -> (i32, i32) {
    %c0_i32 = arith.constant 0 : i32
    %c0_i32_0 = arith.constant 0 : i32
    return %arg0, %c0_i32 : i32, i32
  }
}

module attributes {stable_mosaic.version = 11 : i64} {
  func.func @_attn_kernel(%arg0: i32, %arg1: memref<1x8x32xbf16, #tpu.memory_space<vmem>>, %arg2: memref<1x8x64xbf16, #tpu.memory_space<vmem>>, %arg3: memref<1x1x8xf32, #tpu.memory_space<vmem>>, %arg4: memref<1x8x32xbf16, #tpu.memory_space<vmem>>) attributes {dimension_semantics = [#tpu.dimension_semantics<parallel>], iteration_bounds = array<i64: 2>, scalar_prefetch = 0 : i64, scratch_operands = 0 : i64, tpu.core_type = #tpu.core_type<tc>, window_params = [{transform_indices = @transform_0, window_bounds = array<i64: 1, 8, 32>}, {transform_indices = @transform_1, window_bounds = array<i64: 1, 8, 64>}, {transform_indices = @transform_2, window_bounds = array<i64: 1, 1, 8>}, {transform_indices = @transform_3, window_bounds = array<i64: 1, 8, 32>}]} {
    %c0 = arith.constant 0 : index
    %c0_0 = arith.constant 0 : index
    %c0_1 = arith.constant 0 : index
    %0 = vector.load %arg1[%c0, %c0_0, %c0_1] : memref<1x8x32xbf16, #tpu.memory_space<vmem>>, vector<1x8x32xbf16>
    %1 = vector.shape_cast %0 : vector<1x8x32xbf16> to vector<8x32xbf16>
    %c0_2 = arith.constant 0 : index
    %c0_3 = arith.constant 0 : index
    %c0_4 = arith.constant 0 : index
    %2 = vector.load %arg2[%c0_2, %c0_3, %c0_4] : memref<1x8x64xbf16, #tpu.memory_space<vmem>>, vector<1x8x64xbf16>
    %3 = vector.shape_cast %2 : vector<1x8x64xbf16> to vector<8x64xbf16>
    %c0_5 = arith.constant 0 : index
    %c0_6 = arith.constant 0 : index
    %c0_7 = arith.constant 0 : index
    %4 = vector.load %arg3[%c0_5, %c0_6, %c0_7] : memref<1x1x8xf32, #tpu.memory_space<vmem>>, vector<1x1x8xf32>
    %5 = vector.shape_cast %4 : vector<1x1x8xf32> to vector<1x8xf32>
    %6 = vector.extract_strided_slice %1 {offsets = [0, 0], sizes = [8, 8], strides = [1, 1]} : vector<8x32xbf16> to vector<8x8xbf16>
    %7 = vector.extract_strided_slice %3 {offsets = [0, 0], sizes = [8, 8], strides = [1, 1]} : vector<8x64xbf16> to vector<8x8xbf16>
    %8 = vector.extract_strided_slice %3 {offsets = [0, 32], sizes = [8, 8], strides = [1, 1]} : vector<8x64xbf16> to vector<8x8xbf16>
    %cst = arith.constant dense<0.000000e+00> : vector<8x8xf32>
    %9 = tpu.matmul %6, %7, %cst {dimension_numbers = #tpu.dot_dimension_numbers<[1], [1], [0], [0], [0, 0, 1, 0], [], []>} : vector<8x8xbf16>, vector<8x8xbf16>, vector<8x8xf32> -> vector<8x8xf32>
    %10 = vector.broadcast %5 : vector<1x8xf32> to vector<8x8xf32>
    %11 = arith.addf %9, %10 : vector<8x8xf32>
    %cst_8 = arith.constant dense<0xFF800000> : vector<8xf32>
    %12 = vector.multi_reduction <maximumf>, %11, %cst_8 [1] : vector<8x8xf32> to vector<8xf32>
    %13 = vector.shape_cast %12 : vector<8xf32> to vector<8x1xf32>
    %14 = vector.broadcast %13 : vector<8x1xf32> to vector<8x8xf32>
    %15 = arith.subf %11, %14 : vector<8x8xf32>
    %16 = math.exp %15 : vector<8x8xf32>
    %cst_9 = arith.constant dense<0.000000e+00> : vector<8xf32>
    %17 = vector.multi_reduction <add>, %16, %cst_9 [1] : vector<8x8xf32> to vector<8xf32>
    %18 = vector.shape_cast %17 : vector<8xf32> to vector<8x1xf32>
    %19 = tpu.reciprocal %18 {approx = true} : vector<8x1xf32> -> vector<8x1xf32>
    %20 = vector.broadcast %19 : vector<8x1xf32> to vector<8x8xf32>
    %21 = arith.mulf %16, %20 : vector<8x8xf32>
    %22 = arith.truncf %21 : vector<8x8xf32> to vector<8x8xbf16>
    %cst_10 = arith.constant dense<0.000000e+00> : vector<8x8xf32>
    %23 = tpu.matmul %22, %8, %cst_10 {dimension_numbers = #tpu.dot_dimension_numbers<[1], [0], [0], [1], [0, 0, 1, 1], [], []>} : vector<8x8xbf16>, vector<8x8xbf16>, vector<8x8xf32> -> vector<8x8xf32>
    %24 = arith.truncf %23 : vector<8x8xf32> to vector<8x8xbf16>
    %c0_11 = arith.constant 0 : index
    %c0_12 = arith.constant 0 : index
    %c0_13 = arith.constant 0 : index
    %25 = vector.load %arg4[%c0_11, %c0_12, %c0_13] : memref<1x8x32xbf16, #tpu.memory_space<vmem>>, vector<1x8x8xbf16>
    %26 = vector.shape_cast %25 : vector<1x8x8xbf16> to vector<8x8xbf16>
    %27 = vector.shape_cast %24 : vector<8x8xbf16> to vector<1x8x8xbf16>
    tpu.vector_store %arg4[%c0_11, %c0_12, %c0_13], %27 {strides = array<i32>} : memref<1x8x32xbf16, #tpu.memory_space<vmem>>, vector<1x8x8xbf16>,
    %28 = vector.extract_strided_slice %1 {offsets = [0, 8], sizes = [8, 8], strides = [1, 1]} : vector<8x32xbf16> to vector<8x8xbf16>
    %29 = vector.extract_strided_slice %3 {offsets = [0, 8], sizes = [8, 8], strides = [1, 1]} : vector<8x64xbf16> to vector<8x8xbf16>
    %30 = vector.extract_strided_slice %3 {offsets = [0, 40], sizes = [8, 8], strides = [1, 1]} : vector<8x64xbf16> to vector<8x8xbf16>
    %cst_14 = arith.constant dense<0.000000e+00> : vector<8x8xf32>
    %31 = tpu.matmul %28, %29, %cst_14 {dimension_numbers = #tpu.dot_dimension_numbers<[1], [1], [0], [0], [0, 0, 1, 0], [], []>} : vector<8x8xbf16>, vector<8x8xbf16>, vector<8x8xf32> -> vector<8x8xf32>
    %32 = vector.broadcast %5 : vector<1x8xf32> to vector<8x8xf32>
    %33 = arith.addf %31, %32 : vector<8x8xf32>
    %cst_15 = arith.constant dense<0xFF800000> : vector<8xf32>
    %34 = vector.multi_reduction <maximumf>, %33, %cst_15 [1] : vector<8x8xf32> to vector<8xf32>
    %35 = vector.shape_cast %34 : vector<8xf32> to vector<8x1xf32>
    %36 = vector.broadcast %35 : vector<8x1xf32> to vector<8x8xf32>
    %37 = arith.subf %33, %36 : vector<8x8xf32>
    %38 = math.exp %37 : vector<8x8xf32>
    %cst_16 = arith.constant dense<0.000000e+00> : vector<8xf32>
    %39 = vector.multi_reduction <add>, %38, %cst_16 [1] : vector<8x8xf32> to vector<8xf32>
    %40 = vector.shape_cast %39 : vector<8xf32> to vector<8x1xf32>
    %41 = tpu.reciprocal %40 {approx = true} : vector<8x1xf32> -> vector<8x1xf32>
    %42 = vector.broadcast %41 : vector<8x1xf32> to vector<8x8xf32>
    %43 = arith.mulf %38, %42 : vector<8x8xf32>
    %44 = arith.truncf %43 : vector<8x8xf32> to vector<8x8xbf16>
    %cst_17 = arith.constant dense<0.000000e+00> : vector<8x8xf32>
    %45 = tpu.matmul %44, %30, %cst_17 {dimension_numbers = #tpu.dot_dimension_numbers<[1], [0], [0], [1], [0, 0, 1, 1], [], []>} : vector<8x8xbf16>, vector<8x8xbf16>, vector<8x8xf32> -> vector<8x8xf32>
    %46 = arith.truncf %45 : vector<8x8xf32> to vector<8x8xbf16>
    %c0_18 = arith.constant 0 : index
    %c0_19 = arith.constant 0 : index
    %c8 = arith.constant 8 : index
    %47 = vector.load %arg4[%c0_18, %c0_19, %c8] : memref<1x8x32xbf16, #tpu.memory_space<vmem>>, vector<1x8x8xbf16>
    %48 = vector.shape_cast %47 : vector<1x8x8xbf16> to vector<8x8xbf16>
    %49 = vector.shape_cast %46 : vector<8x8xbf16> to vector<1x8x8xbf16>
    tpu.vector_store %arg4[%c0_18, %c0_19, %c8], %49 {strides = array<i32>} : memref<1x8x32xbf16, #tpu.memory_space<vmem>>, vector<1x8x8xbf16>,
    %50 = vector.extract_strided_slice %1 {offsets = [0, 16], sizes = [8, 8], strides = [1, 1]} : vector<8x32xbf16> to vector<8x8xbf16>
    %51 = vector.extract_strided_slice %3 {offsets = [0, 16], sizes = [8, 8], strides = [1, 1]} : vector<8x64xbf16> to vector<8x8xbf16>
    %52 = vector.extract_strided_slice %3 {offsets = [0, 48], sizes = [8, 8], strides = [1, 1]} : vector<8x64xbf16> to vector<8x8xbf16>
    %cst_20 = arith.constant dense<0.000000e+00> : vector<8x8xf32>
    %53 = tpu.matmul %50, %51, %cst_20 {dimension_numbers = #tpu.dot_dimension_numbers<[1], [1], [0], [0], [0, 0, 1, 0], [], []>} : vector<8x8xbf16>, vector<8x8xbf16>, vector<8x8xf32> -> vector<8x8xf32>
    %54 = vector.broadcast %5 : vector<1x8xf32> to vector<8x8xf32>
    %55 = arith.addf %53, %54 : vector<8x8xf32>
    %cst_21 = arith.constant dense<0xFF800000> : vector<8xf32>
    %56 = vector.multi_reduction <maximumf>, %55, %cst_21 [1] : vector<8x8xf32> to vector<8xf32>
    %57 = vector.shape_cast %56 : vector<8xf32> to vector<8x1xf32>
    %58 = vector.broadcast %57 : vector<8x1xf32> to vector<8x8xf32>
    %59 = arith.subf %55, %58 : vector<8x8xf32>
    %60 = math.exp %59 : vector<8x8xf32>
    %cst_22 = arith.constant dense<0.000000e+00> : vector<8xf32>
    %61 = vector.multi_reduction <add>, %60, %cst_22 [1] : vector<8x8xf32> to vector<8xf32>
    %62 = vector.shape_cast %61 : vector<8xf32> to vector<8x1xf32>
    %63 = tpu.reciprocal %62 {approx = true} : vector<8x1xf32> -> vector<8x1xf32>
    %64 = vector.broadcast %63 : vector<8x1xf32> to vector<8x8xf32>
    %65 = arith.mulf %60, %64 : vector<8x8xf32>
    %66 = arith.truncf %65 : vector<8x8xf32> to vector<8x8xbf16>
    %cst_23 = arith.constant dense<0.000000e+00> : vector<8x8xf32>
    %67 = tpu.matmul %66, %52, %cst_23 {dimension_numbers = #tpu.dot_dimension_numbers<[1], [0], [0], [1], [0, 0, 1, 1], [], []>} : vector<8x8xbf16>, vector<8x8xbf16>, vector<8x8xf32> -> vector<8x8xf32>
    %68 = arith.truncf %67 : vector<8x8xf32> to vector<8x8xbf16>
    %c0_24 = arith.constant 0 : index
    %c0_25 = arith.constant 0 : index
    %c16 = arith.constant 16 : index
    %69 = vector.load %arg4[%c0_24, %c0_25, %c16] : memref<1x8x32xbf16, #tpu.memory_space<vmem>>, vector<1x8x8xbf16>
    %70 = vector.shape_cast %69 : vector<1x8x8xbf16> to vector<8x8xbf16>
    %71 = vector.shape_cast %68 : vector<8x8xbf16> to vector<1x8x8xbf16>
    tpu.vector_store %arg4[%c0_24, %c0_25, %c16], %71 {strides = array<i32>} : memref<1x8x32xbf16, #tpu.memory_space<vmem>>, vector<1x8x8xbf16>,
    %72 = vector.extract_strided_slice %1 {offsets = [0, 24], sizes = [8, 8], strides = [1, 1]} : vector<8x32xbf16> to vector<8x8xbf16>
    %73 = vector.extract_strided_slice %3 {offsets = [0, 24], sizes = [8, 8], strides = [1, 1]} : vector<8x64xbf16> to vector<8x8xbf16>
    %74 = vector.extract_strided_slice %3 {offsets = [0, 56], sizes = [8, 8], strides = [1, 1]} : vector<8x64xbf16> to vector<8x8xbf16>
    %cst_26 = arith.constant dense<0.000000e+00> : vector<8x8xf32>
    %75 = tpu.matmul %72, %73, %cst_26 {dimension_numbers = #tpu.dot_dimension_numbers<[1], [1], [0], [0], [0, 0, 1, 0], [], []>} : vector<8x8xbf16>, vector<8x8xbf16>, vector<8x8xf32> -> vector<8x8xf32>
    %76 = vector.broadcast %5 : vector<1x8xf32> to vector<8x8xf32>
    %77 = arith.addf %75, %76 : vector<8x8xf32>
    %cst_27 = arith.constant dense<0xFF800000> : vector<8xf32>
    %78 = vector.multi_reduction <maximumf>, %77, %cst_27 [1] : vector<8x8xf32> to vector<8xf32>
    %79 = vector.shape_cast %78 : vector<8xf32> to vector<8x1xf32>
    %80 = vector.broadcast %79 : vector<8x1xf32> to vector<8x8xf32>
    %81 = arith.subf %77, %80 : vector<8x8xf32>
    %82 = math.exp %81 : vector<8x8xf32>
    %cst_28 = arith.constant dense<0.000000e+00> : vector<8xf32>
    %83 = vector.multi_reduction <add>, %82, %cst_28 [1] : vector<8x8xf32> to vector<8xf32>
    %84 = vector.shape_cast %83 : vector<8xf32> to vector<8x1xf32>
    %85 = tpu.reciprocal %84 {approx = true} : vector<8x1xf32> -> vector<8x1xf32>
    %86 = vector.broadcast %85 : vector<8x1xf32> to vector<8x8xf32>
    %87 = arith.mulf %82, %86 : vector<8x8xf32>
    %88 = arith.truncf %87 : vector<8x8xf32> to vector<8x8xbf16>
    %cst_29 = arith.constant dense<0.000000e+00> : vector<8x8xf32>
    %89 = tpu.matmul %88, %74, %cst_29 {dimension_numbers = #tpu.dot_dimension_numbers<[1], [0], [0], [1], [0, 0, 1, 1], [], []>} : vector<8x8xbf16>, vector<8x8xbf16>, vector<8x8xf32> -> vector<8x8xf32>
    %90 = arith.truncf %89 : vector<8x8xf32> to vector<8x8xbf16>
    %c0_30 = arith.constant 0 : index
    %c0_31 = arith.constant 0 : index
    %c24 = arith.constant 24 : index
    %91 = vector.load %arg4[%c0_30, %c0_31, %c24] : memref<1x8x32xbf16, #tpu.memory_space<vmem>>, vector<1x8x8xbf16>
    %92 = vector.shape_cast %91 : vector<1x8x8xbf16> to vector<8x8xbf16>
    %93 = vector.shape_cast %90 : vector<8x8xbf16> to vector<1x8x8xbf16>
    tpu.vector_store %arg4[%c0_30, %c0_31, %c24], %93 {strides = array<i32>} : memref<1x8x32xbf16, #tpu.memory_space<vmem>>, vector<1x8x8xbf16>,
    return
  }
  func.func @transform_0(%arg0: i32) -> (i32, i32, i32) {
    %c0_i32 = arith.constant 0 : i32
    %c0_i32_0 = arith.constant 0 : i32
    %c0_i32_1 = arith.constant 0 : i32
    return %arg0, %c0_i32, %c0_i32_0 : i32, i32, i32
  }
  func.func @transform_1(%arg0: i32) -> (i32, i32, i32) {
    %c0_i32 = arith.constant 0 : i32
    %c0_i32_0 = arith.constant 0 : i32
    %c0_i32_1 = arith.constant 0 : i32
    return %arg0, %c0_i32, %c0_i32_0 : i32, i32, i32
  }
  func.func @transform_2(%arg0: i32) -> (i32, i32, i32) {
    %c0_i32 = arith.constant 0 : i32
    %c0_i32_0 = arith.constant 0 : i32
    %c0_i32_1 = arith.constant 0 : i32
    return %arg0, %c0_i32, %c0_i32_0 : i32, i32, i32
  }
  func.func @transform_3(%arg0: i32) -> (i32, i32, i32) {
    %c0_i32 = arith.constant 0 : i32
    %c0_i32_0 = arith.constant 0 : i32
    %c0_i32_1 = arith.constant 0 : i32
    return %arg0, %c0_i32, %c0_i32_0 : i32, i32, i32
  }
}

module attributes {stable_mosaic.version = 11 : i64} {
  func.func @_ffn_res_ln_kernel(%arg0: i32, %arg1: memref<16x32xf32, #tpu.memory_space<vmem>>, %arg2: memref<16x1xf32, #tpu.memory_space<vmem>>, %arg3: memref<32x64xbf16, #tpu.memory_space<vmem>>, %arg4: memref<1x64xf32, #tpu.memory_space<vmem>>, %arg5: memref<64x32xbf16, #tpu.memory_space<vmem>>, %arg6: memref<1x32xf32, #tpu.memory_space<vmem>>, %arg7: memref<1x32xf32, #tpu.memory_space<vmem>>, %arg8: memref<1x32xf32, #tpu.memory_space<vmem>>, %arg9: memref<16x32xf32, #tpu.memory_space<vmem>>) attributes {dimension_semantics = [#tpu.dimension_semantics<parallel>], iteration_bounds = array<i64: 1>, scalar_prefetch = 0 : i64, scratch_operands = 0 : i64, tpu.core_type = #tpu.core_type<tc>, window_params = [{transform_indices = @transform_0, window_bounds = array<i64: 16, 32>}, {transform_indices = @transform_1, window_bounds = array<i64: 16, 1>}, {pipeline_mode = #tpu.pipeline_mode<synchronous>, transform_indices = @transform_2, window_bounds = array<i64: 32, 64>}, {pipeline_mode = #tpu.pipeline_mode<synchronous>, transform_indices = @transform_3, window_bounds = array<i64: 1, 64>}, {pipeline_mode = #tpu.pipeline_mode<synchronous>, transform_indices = @transform_4, window_bounds = array<i64: 64, 32>}, {pipeline_mode = #tpu.pipeline_mode<synchronous>, transform_indices = @transform_5, window_bounds = array<i64: 1, 32>}, {pipeline_mode = #tpu.pipeline_mode<synchronous>, transform_indices = @transform_6, window_bounds = array<i64: 1, 32>}, {pipeline_mode = #tpu.pipeline_mode<synchronous>, transform_indices = @transform_7, window_bounds = array<i64: 1, 32>}, {transform_indices = @transform_8, window_bounds = array<i64: 16, 32>}]} {
    %c0 = arith.constant 0 : index
    %c0_0 = arith.constant 0 : index
    %0 = vector.load %arg1[%c0, %c0_0] : memref<16x32xf32, #tpu.memory_space<vmem>>, vector<16x32xf32>
    %1 = arith.truncf %0 : vector<16x32xf32> to vector<16x32xbf16>
    %c0_1 = arith.constant 0 : index
    %c0_2 = arith.constant 0 : index
    %2 = vector.load %arg3[%c0_1, %c0_2] : memref<32x64xbf16, #tpu.memory_space<vmem>>, vector<32x64xbf16>
    %cst = arith.constant dense<0.000000e+00> : vector<16x64xf32>
    %3 = tpu.matmul %1, %2, %cst {dimension_numbers = #tpu.dot_dimension_numbers<[1], [0], [0], [1], [0, 0, 1, 1], [], []>} : vector<16x32xbf16>, vector<32x64xbf16>, vector<16x64xf32> -> vector<16x64xf32>
    %c0_3 = arith.constant 0 : index
    %c0_4 = arith.constant 0 : index
    %4 = vector.load %arg4[%c0_3, %c0_4] : memref<1x64xf32, #tpu.memory_space<vmem>>, vector<1x64xf32>
    %5 = vector.broadcast %4 : vector<1x64xf32> to vector<16x64xf32>
    %6 = arith.addf %3, %5 : vector<16x64xf32>
    %cst_5 = arith.constant 0.000000e+00 : f32
    %7 = vector.broadcast %cst_5 : f32 to vector<16x64xf32>
    %8 = arith.maximumf %6, %7 : vector<16x64xf32>
    %9 = arith.truncf %8 : vector<16x64xf32> to vector<16x64xbf16>
    %c0_6 = arith.constant 0 : index
    %c0_7 = arith.constant 0 : index
    %10 = vector.load %arg5[%c0_6, %c0_7] : memref<64x32xbf16, #tpu.memory_space<vmem>>, vector<64x32xbf16>
    %cst_8 = arith.constant dense<0.000000e+00> : vector<16x32xf32>
    %11 = tpu.matmul %9, %10, %cst_8 {dimension_numbers = #tpu.dot_dimension_numbers<[1], [0], [0], [1], [0, 0, 1, 1], [], []>} : vector<16x64xbf16>, vector<64x32xbf16>, vector<16x32xf32> -> vector<16x32xf32>
    %c0_9 = arith.constant 0 : index
    %c0_10 = arith.constant 0 : index
    %12 = vector.load %arg6[%c0_9, %c0_10] : memref<1x32xf32, #tpu.memory_space<vmem>>, vector<1x32xf32>
    %13 = vector.broadcast %12 : vector<1x32xf32> to vector<16x32xf32>
    %14 = arith.addf %11, %13 : vector<16x32xf32>
    %15 = arith.addf %14, %0 : vector<16x32xf32>
    %cst_11 = arith.constant dense<0.000000e+00> : vector<16xf32>
    %16 = vector.multi_reduction <add>, %15, %cst_11 [1] : vector<16x32xf32> to vector<16xf32>
    %17 = vector.shape_cast %16 : vector<16xf32> to vector<16x1xf32>
    %cst_12 = arith.constant 3.200000e+01 : f32
    %18 = vector.broadcast %cst_12 : f32 to vector<16x1xf32>
    %19 = arith.divf %17, %18 : vector<16x1xf32>
    %20 = vector.broadcast %19 : vector<16x1xf32> to vector<16x32xf32>
    %21 = arith.subf %15, %20 : vector<16x32xf32>
    %22 = arith.mulf %21, %21 : vector<16x32xf32>
    %cst_13 = arith.constant dense<0.000000e+00> : vector<16xf32>
    %23 = vector.multi_reduction <add>, %22, %cst_13 [1] : vector<16x32xf32> to vector<16xf32>
    %24 = vector.shape_cast %23 : vector<16xf32> to vector<16x1xf32>
    %cst_14 = arith.constant 3.200000e+01 : f32
    %25 = vector.broadcast %cst_14 : f32 to vector<16x1xf32>
    %26 = arith.divf %24, %25 : vector<16x1xf32>
    %27 = vector.broadcast %19 : vector<16x1xf32> to vector<16x32xf32>
    %28 = arith.subf %15, %27 : vector<16x32xf32>
    %cst_15 = arith.constant 9.99999997E-7 : f32
    %29 = vector.broadcast %cst_15 : f32 to vector<16x1xf32>
    %30 = arith.addf %26, %29 : vector<16x1xf32>
    %31 = math.rsqrt %30 : vector<16x1xf32>
    %32 = vector.broadcast %31 : vector<16x1xf32> to vector<16x32xf32>
    %33 = arith.mulf %28, %32 : vector<16x32xf32>
    %c0_16 = arith.constant 0 : index
    %c0_17 = arith.constant 0 : index
    %34 = vector.load %arg7[%c0_16, %c0_17] : memref<1x32xf32, #tpu.memory_space<vmem>>, vector<1x32xf32>
    %35 = vector.broadcast %34 : vector<1x32xf32> to vector<16x32xf32>
    %36 = arith.mulf %33, %35 : vector<16x32xf32>
    %c0_18 = arith.constant 0 : index
    %c0_19 = arith.constant 0 : index
    %37 = vector.load %arg8[%c0_18, %c0_19] : memref<1x32xf32, #tpu.memory_space<vmem>>, vector<1x32xf32>
    %38 = vector.broadcast %37 : vector<1x32xf32> to vector<16x32xf32>
    %39 = arith.addf %36, %38 : vector<16x32xf32>
    %c0_20 = arith.constant 0 : index
    %c0_21 = arith.constant 0 : index
    %40 = vector.load %arg2[%c0_20, %c0_21] : memref<16x1xf32, #tpu.memory_space<vmem>>, vector<16x1xf32>
    %41 = vector.broadcast %40 : vector<16x1xf32> to vector<16x32xf32>
    %42 = arith.mulf %39, %41 : vector<16x32xf32>
    %c0_22 = arith.constant 0 : index
    %c0_23 = arith.constant 0 : index
    %43 = vector.load %arg9[%c0_22, %c0_23] : memref<16x32xf32, #tpu.memory_space<vmem>>, vector<16x32xf32>
    tpu.vector_store %arg9[%c0_22, %c0_23], %42 {strides = array<i32>} : memref<16x32xf32, #tpu.memory_space<vmem>>, vector<16x32xf32>,
    return
  }
  func.func @transform_0(%arg0: i32) -> (i32, i32) {
    %c0_i32 = arith.constant 0 : i32
    %c0_i32_0 = arith.constant 0 : i32
    return %arg0, %c0_i32 : i32, i32
  }
  func.func @transform_1(%arg0: i32) -> (i32, i32) {
    %c0_i32 = arith.constant 0 : i32
    %c0_i32_0 = arith.constant 0 : i32
    return %arg0, %c0_i32 : i32, i32
  }
  func.func @transform_2(%arg0: i32) -> (i32, i32) {
    %c0_i32 = arith.constant 0 : i32
    %c0_i32_0 = arith.constant 0 : i32
    %c0_i32_1 = arith.constant 0 : i32
    return %c0_i32, %c0_i32_0 : i32, i32
  }
  func.func @transform_3(%arg0: i32) -> (i32, i32) {
    %c0_i32 = arith.constant 0 : i32
    %c0_i32_0 = arith.constant 0 : i32
    %c0_i32_1 = arith.constant 0 : i32
    return %c0_i32, %c0_i32_0 : i32, i32
  }
  func.func @transform_4(%arg0: i32) -> (i32, i32) {
    %c0_i32 = arith.constant 0 : i32
    %c0_i32_0 = arith.constant 0 : i32
    %c0_i32_1 = arith.constant 0 : i32
    return %c0_i32, %c0_i32_0 : i32, i32
  }
  func.func @transform_5(%arg0: i32) -> (i32, i32) {
    %c0_i32 = arith.constant 0 : i32
    %c0_i32_0 = arith.constant 0 : i32
    %c0_i32_1 = arith.constant 0 : i32
    return %c0_i32, %c0_i32_0 : i32, i32
  }
  func.func @transform_6(%arg0: i32) -> (i32, i32) {
    %c0_i32 = arith.constant 0 : i32
    %c0_i32_0 = arith.constant 0 : i32
    %c0_i32_1 = arith.constant 0 : i32
    return %c0_i32, %c0_i32_0 : i32, i32
  }
  func.func @transform_7(%arg0: i32) -> (i32, i32) {
    %c0_i32 = arith.constant 0 : i32
    %c0_i32_0 = arith.constant 0 : i32
    %c0_i32_1 = arith.constant 0 : i32
    return %c0_i32, %c0_i32_0 : i32, i32
  }
  func.func @transform_8(%arg0: i32) -> (i32, i32) {
    %c0_i32 = arith.constant 0 : i32
    %c0_i32_0 = arith.constant 0 : i32
    return %arg0, %c0_i32 : i32, i32
  }
}

module attributes {stable_mosaic.version = 11 : i64} {
  func.func @_ffn_res_ln_kernel(%arg0: i32, %arg1: memref<16x32xf32, #tpu.memory_space<vmem>>, %arg2: memref<16x1xf32, #tpu.memory_space<vmem>>, %arg3: memref<32x64xbf16, #tpu.memory_space<vmem>>, %arg4: memref<1x64xf32, #tpu.memory_space<vmem>>, %arg5: memref<64x32xbf16, #tpu.memory_space<vmem>>, %arg6: memref<1x32xf32, #tpu.memory_space<vmem>>, %arg7: memref<1x32xf32, #tpu.memory_space<vmem>>, %arg8: memref<1x32xf32, #tpu.memory_space<vmem>>, %arg9: memref<16x32xf32, #tpu.memory_space<vmem>>) attributes {dimension_semantics = [#tpu.dimension_semantics<parallel>], iteration_bounds = array<i64: 1>, scalar_prefetch = 0 : i64, scratch_operands = 0 : i64, tpu.core_type = #tpu.core_type<tc>, window_params = [{transform_indices = @transform_0, window_bounds = array<i64: 16, 32>}, {transform_indices = @transform_1, window_bounds = array<i64: 16, 1>}, {pipeline_mode = #tpu.pipeline_mode<synchronous>, transform_indices = @transform_2, window_bounds = array<i64: 32, 64>}, {pipeline_mode = #tpu.pipeline_mode<synchronous>, transform_indices = @transform_3, window_bounds = array<i64: 1, 64>}, {pipeline_mode = #tpu.pipeline_mode<synchronous>, transform_indices = @transform_4, window_bounds = array<i64: 64, 32>}, {pipeline_mode = #tpu.pipeline_mode<synchronous>, transform_indices = @transform_5, window_bounds = array<i64: 1, 32>}, {pipeline_mode = #tpu.pipeline_mode<synchronous>, transform_indices = @transform_6, window_bounds = array<i64: 1, 32>}, {pipeline_mode = #tpu.pipeline_mode<synchronous>, transform_indices = @transform_7, window_bounds = array<i64: 1, 32>}, {transform_indices = @transform_8, window_bounds = array<i64: 16, 32>}]} {
    %c0 = arith.constant 0 : index
    %c0_0 = arith.constant 0 : index
    %0 = vector.load %arg1[%c0, %c0_0] : memref<16x32xf32, #tpu.memory_space<vmem>>, vector<16x32xf32>
    %1 = arith.truncf %0 : vector<16x32xf32> to vector<16x32xbf16>
    %c0_1 = arith.constant 0 : index
    %c0_2 = arith.constant 0 : index
    %2 = vector.load %arg3[%c0_1, %c0_2] : memref<32x64xbf16, #tpu.memory_space<vmem>>, vector<32x64xbf16>
    %cst = arith.constant dense<0.000000e+00> : vector<16x64xf32>
    %3 = tpu.matmul %1, %2, %cst {dimension_numbers = #tpu.dot_dimension_numbers<[1], [0], [0], [1], [0, 0, 1, 1], [], []>} : vector<16x32xbf16>, vector<32x64xbf16>, vector<16x64xf32> -> vector<16x64xf32>
    %c0_3 = arith.constant 0 : index
    %c0_4 = arith.constant 0 : index
    %4 = vector.load %arg4[%c0_3, %c0_4] : memref<1x64xf32, #tpu.memory_space<vmem>>, vector<1x64xf32>
    %5 = vector.broadcast %4 : vector<1x64xf32> to vector<16x64xf32>
    %6 = arith.addf %3, %5 : vector<16x64xf32>
    %cst_5 = arith.constant 0.000000e+00 : f32
    %7 = vector.broadcast %cst_5 : f32 to vector<16x64xf32>
    %8 = arith.maximumf %6, %7 : vector<16x64xf32>
    %9 = arith.truncf %8 : vector<16x64xf32> to vector<16x64xbf16>
    %c0_6 = arith.constant 0 : index
    %c0_7 = arith.constant 0 : index
    %10 = vector.load %arg5[%c0_6, %c0_7] : memref<64x32xbf16, #tpu.memory_space<vmem>>, vector<64x32xbf16>
    %cst_8 = arith.constant dense<0.000000e+00> : vector<16x32xf32>
    %11 = tpu.matmul %9, %10, %cst_8 {dimension_numbers = #tpu.dot_dimension_numbers<[1], [0], [0], [1], [0, 0, 1, 1], [], []>} : vector<16x64xbf16>, vector<64x32xbf16>, vector<16x32xf32> -> vector<16x32xf32>
    %c0_9 = arith.constant 0 : index
    %c0_10 = arith.constant 0 : index
    %12 = vector.load %arg6[%c0_9, %c0_10] : memref<1x32xf32, #tpu.memory_space<vmem>>, vector<1x32xf32>
    %13 = vector.broadcast %12 : vector<1x32xf32> to vector<16x32xf32>
    %14 = arith.addf %11, %13 : vector<16x32xf32>
    %15 = arith.addf %14, %0 : vector<16x32xf32>
    %cst_11 = arith.constant dense<0.000000e+00> : vector<16xf32>
    %16 = vector.multi_reduction <add>, %15, %cst_11 [1] : vector<16x32xf32> to vector<16xf32>
    %17 = vector.shape_cast %16 : vector<16xf32> to vector<16x1xf32>
    %cst_12 = arith.constant 3.200000e+01 : f32
    %18 = vector.broadcast %cst_12 : f32 to vector<16x1xf32>
    %19 = arith.divf %17, %18 : vector<16x1xf32>
    %20 = vector.broadcast %19 : vector<16x1xf32> to vector<16x32xf32>
    %21 = arith.subf %15, %20 : vector<16x32xf32>
    %22 = arith.mulf %21, %21 : vector<16x32xf32>
    %cst_13 = arith.constant dense<0.000000e+00> : vector<16xf32>
    %23 = vector.multi_reduction <add>, %22, %cst_13 [1] : vector<16x32xf32> to vector<16xf32>
    %24 = vector.shape_cast %23 : vector<16xf32> to vector<16x1xf32>
    %cst_14 = arith.constant 3.200000e+01 : f32
    %25 = vector.broadcast %cst_14 : f32 to vector<16x1xf32>
    %26 = arith.divf %24, %25 : vector<16x1xf32>
    %27 = vector.broadcast %19 : vector<16x1xf32> to vector<16x32xf32>
    %28 = arith.subf %15, %27 : vector<16x32xf32>
    %cst_15 = arith.constant 9.99999997E-7 : f32
    %29 = vector.broadcast %cst_15 : f32 to vector<16x1xf32>
    %30 = arith.addf %26, %29 : vector<16x1xf32>
    %31 = math.rsqrt %30 : vector<16x1xf32>
    %32 = vector.broadcast %31 : vector<16x1xf32> to vector<16x32xf32>
    %33 = arith.mulf %28, %32 : vector<16x32xf32>
    %c0_16 = arith.constant 0 : index
    %c0_17 = arith.constant 0 : index
    %34 = vector.load %arg7[%c0_16, %c0_17] : memref<1x32xf32, #tpu.memory_space<vmem>>, vector<1x32xf32>
    %35 = vector.broadcast %34 : vector<1x32xf32> to vector<16x32xf32>
    %36 = arith.mulf %33, %35 : vector<16x32xf32>
    %c0_18 = arith.constant 0 : index
    %c0_19 = arith.constant 0 : index
    %37 = vector.load %arg8[%c0_18, %c0_19] : memref<1x32xf32, #tpu.memory_space<vmem>>, vector<1x32xf32>
    %38 = vector.broadcast %37 : vector<1x32xf32> to vector<16x32xf32>
    %39 = arith.addf %36, %38 : vector<16x32xf32>
    %c0_20 = arith.constant 0 : index
    %c0_21 = arith.constant 0 : index
    %40 = vector.load %arg2[%c0_20, %c0_21] : memref<16x1xf32, #tpu.memory_space<vmem>>, vector<16x1xf32>
    %41 = vector.broadcast %40 : vector<16x1xf32> to vector<16x32xf32>
    %42 = arith.mulf %39, %41 : vector<16x32xf32>
    %c0_22 = arith.constant 0 : index
    %c0_23 = arith.constant 0 : index
    %43 = vector.load %arg9[%c0_22, %c0_23] : memref<16x32xf32, #tpu.memory_space<vmem>>, vector<16x32xf32>
    tpu.vector_store %arg9[%c0_22, %c0_23], %42 {strides = array<i32>} : memref<16x32xf32, #tpu.memory_space<vmem>>, vector<16x32xf32>,
    return
  }
  func.func @transform_0(%arg0: i32) -> (i32, i32) {
    %c0_i32 = arith.constant 0 : i32
    %c0_i32_0 = arith.constant 0 : i32
    return %arg0, %c0_i32 : i32, i32
  }
  func.func @transform_1(%arg0: i32) -> (i32, i32) {
    %c0_i32 = arith.constant 0 : i32
    %c0_i32_0 = arith.constant 0 : i32
    return %arg0, %c0_i32 : i32, i32
  }
  func.func @transform_2(%arg0: i32) -> (i32, i32) {
    %c0_i32 = arith.constant 0 : i32
    %c0_i32_0 = arith.constant 0 : i32
    %c0_i32_1 = arith.constant 0 : i32
    return %c0_i32, %c0_i32_0 : i32, i32
  }
  func.func @transform_3(%arg0: i32) -> (i32, i32) {
    %c0_i32 = arith.constant 0 : i32
    %c0_i32_0 = arith.constant 0 : i32
    %c0_i32_1 = arith.constant 0 : i32
    return %c0_i32, %c0_i32_0 : i32, i32
  }
  func.func @transform_4(%arg0: i32) -> (i32, i32) {
    %c0_i32 = arith.constant 0 : i32
    %c0_i32_0 = arith.constant 0 : i32
    %c0_i32_1 = arith.constant 0 : i32
    return %c0_i32, %c0_i32_0 : i32, i32
  }
  func.func @transform_5(%arg0: i32) -> (i32, i32) {
    %c0_i32 = arith.constant 0 : i32
    %c0_i32_0 = arith.constant 0 : i32
    %c0_i32_1 = arith.constant 0 : i32
    return %c0_i32, %c0_i32_0 : i32, i32
  }
  func.func @transform_6(%arg0: i32) -> (i32, i32) {
    %c0_i32 = arith.constant 0 : i32
    %c0_i32_0 = arith.constant 0 : i32
    %c0_i32_1 = arith.constant 0 : i32
    return %c0_i32, %c0_i32_0 : i32, i32
  }
  func.func @transform_7(%arg0: i32) -> (i32, i32) {
    %c0_i32 = arith.constant 0 : i32
    %c0_i32_0 = arith.constant 0 : i32
    %c0_i32_1 = arith.constant 0 : i32
    return %c0_i32, %c0_i32_0 : i32, i32
  }
  func.func @transform_8(%arg0: i32) -> (i32, i32) {
    %c0_i32 = arith.constant 0 : i32
    %c0_i32_0 = arith.constant 0 : i32
    return %arg0, %c0_i32 : i32, i32
  }
}

</mosaic_0001>

<bundles_post_ra>
// kernel: decoder_forward.18
= control target key start
LH: loop header
LB: loop body
LE: loop exit
PB: predicated region body
PF: predicated region fallthrough
CT: control target
= control target key end

     0   :  { %v201_v0 = vmov 0.0   ;;  %vm202_vm0 = vmmov 0   ;;  %vm57_vm1 = vcmask 261120   ;;  %v203_v17 = vmov 0   ;;  %s287_s3 = inlined_call_operand.vmem [shape: bf16[32,32], index: 3, kind: input, shape index: {}]   ;;  %s288_s0 = inlined_call_operand.vmem [shape: bf16[16,32], index: 0, kind: input, shape index: {}]   ;;  %s289_s4 = inlined_call_operand.vmem [shape: f32[1,32], index: 4, kind: input, shape index: {}]   ;;  %s290_s1 = inlined_call_operand.vmem [shape: f32[16,32], index: 1, kind: input, shape index: {}]   ;;  %s291_s2 = inlined_call_operand.vmem [shape: f32[16,1], index: 2, kind: input, shape index: {}]   ;;  %s292_s5 = inlined_call_operand.vmem [shape: f32[1,32], index: 5, kind: input, shape index: {}]   ;;  %s293_s6 = inlined_call_operand.vmem [shape: f32[1,32], index: 6, kind: input, shape index: {}]   ;;  %s294_s7 = inlined_call_operand.vmem [shape: f32[16,32], index: 7, kind: output, shape index: {}]  }
   0x1   :  { %181 = vmatprep.subr.bf16.mxu0 %v201_v0  ;;  %v194_v1 = vld [vmem:[%s287_s3 + $0x8] sm:$0xff]   ;;  %185 = vmatprep.mubr.msk.bf16.mxu0 %vm202_vm0, %v201_v0  ;;  %v195_v2 = vld [vmem:[%s287_s3] sm:$0xff]  }
   0x2   :  { %182 = vmatpush3.bf16.msra.mxu0 %v194_v1  ;;  %v196_v3 = vld [vmem:[%s288_s0] sm:$0xff]   ;;  %v103_v11 = vld [vmem:[%s290_s1 + $0x8] sm:$0xff]  ;;  %192 = vset.pattern.permute.xlu0 %v203_v17 }
   0x3   :  { %183 = vmatprep.subr.bf16.mxu0 %v201_v0  ;;  %v171_v4 = vld [vmem:[%s289_s4] ss:$0 sm:$0xff]  ;;  %193 = vset.pattern.permute.xlu1 %v203_v17  ;;  %v152_v29 = vld [vmem:[%s291_s2 + $0x8] sm:$0xff] }
   0x4   :  { %v102_v6 = vld [vmem:[%s290_s1] sm:$0xff] }
   0x5   :  { %v151_v18 = vld [vmem:[%s291_s2] sm:$0xff] }
   0x6   :  { %184 = vmatpush3.bf16.msra.mxu0 %v195_v2  ;;  %v176_v37 = vld [vmem:[%s292_s5] ss:$0 sm:$0xff] }
   0x7   :  { %v177_v39 = vld [vmem:[%s293_s6] ss:$0 sm:$0xff] }
   0x9   :  { %186 = vmatmul.mubr.msk.bf16.vlgmr.msra.gmra.mxu0 %vm57_vm1, %v196_v3 }
  0xc9   :  { %v95_v5 = vpop.f32.mrf.mxu0 }
  0xca   :  { %v96_v7 = vadd.f32 %v171_v4, %v95_v5 }
  0xcb   :  { %v187_v8 = vpop.f32.mrf.mxu0 }
  0xcc   :  { %v104_v9 = vadd.f32 %v102_v6, %v96_v7 }
  0xcd   :  { %v98_v10 = vpop.f32.mrf.mxu0 }
  0xce   :  { %v99_v12 = vadd.f32 %v171_v4, %v98_v10  ;;  %v106_v13 = vsel %vm57_vm1, %v104_v9, 0.0 }
  0xcf   :  { %107 = vadd.xlane.f32.xlu0 %v106_v13  ;;  %v188_v14 = vpop.f32.mrf.mxu0 }
  0xd0   :  { %v105_v15 = vadd.f32 %v103_v11, %v99_v12 }
  0xd2   :  { %v109_v16 = vsel %vm57_vm1, %v105_v15, 0.0 }
  0xd3   :  { %110 = vadd.xlane.f32.xlu0 %v109_v16 }
  0xe9   :  { %155 = vperm.xlu0 %192, %v151_v18  }
 0x158   :  { %v108_v19 = vpop.xlane.xlu0 %107 }
 0x159   :  { %v113_v20 = vmul.f32 0.03125, %v108_v19 }
 0x15b   :  { %v115_v21 = vsub.f32 %v104_v9, %v113_v20 }
 0x15c   :  { %v111_v22 = vpop.xlane.xlu0 %110 }
 0x15d   :  { %v114_v23 = vmul.f32 0.03125, %v111_v22  ;;  %v117_v24 = vmul.f32 %v115_v21, %v115_v21 }
 0x15f   :  { %v116_v25 = vsub.f32 %v105_v15, %v114_v23  ;;  %v119_v26 = vsel %vm57_vm1, %v117_v24, 0.0 }
 0x160   :  { %120 = vadd.xlane.f32.xlu1 %v119_v26 }
 0x161   :  { %v118_v27 = vmul.f32 %v116_v25, %v116_v25 }
 0x163   :  { %v122_v28 = vsel %vm57_vm1, %v118_v27, 0.0 }
 0x164   :  { %123 = vadd.xlane.f32.xlu1 %v122_v28  ;;  %v156_v42 = vpop.permute.xlu0 %155 }
 0x175   :  { %160 = vperm.xlu1 %193, %v152_v29  }
 0x1e9   :  { %v121_v30 = vpop.xlane.xlu1 %120 }
 0x1ea   :  { %v125_v31 = vmul.f32 0.03125, %v121_v30 }
 0x1ec   :  { %v127_v32 = vadd.f32 1e-06, %v125_v31 }
 0x1ed   :  { %v124_v33 = vpop.xlane.xlu1 %123 }
 0x1ee   :  { %197 = vrsqrt.f32 %v127_v32  ;;  %v126_v34 = vmul.f32 0.03125, %v124_v33 }
 0x1f0   :  { %v128_v35 = vadd.f32 1e-06, %v126_v34 }
 0x1f1   :  { %v161_v47 = vpop.permute.xlu1 %160 }
 0x1f2   :  { %199 = vrsqrt.f32 %v128_v35 }
 0x1fb   :  { %v198_v36 = vpop.eup %197 }
 0x1fc   :  { %v131_v38 = vmul.f32 %v198_v36, %v115_v21 }
 0x1fe   :  { %v140_v40 = vmul.f32 %v176_v37, %v131_v38 }
 0x1ff   :  { %v200_v41 = vpop.eup %199 }
 0x200   :  { %v149_v43 = vadd.f32 %v177_v39, %v140_v40  ;;  %v132_v44 = vmul.f32 %v200_v41, %v116_v25 }
 0x202   :  { %v163_v45 = vmul.f32 %v156_v42, %v149_v43  ;;  %v141_v46 = vmul.f32 %v176_v37, %v132_v44 }
 0x204   :  { %165 = vst.msk [vmem:[%s294_s7] sm:$0xff] %vm57_vm1, %v163_v45  ;;  %v150_v48 = vadd.f32 %v177_v39, %v141_v46 }
 0x206   :  { %v164_v49 = vmul.f32 %v161_v47, %v150_v48 }
 0x208   :  { %166 = vst.msk [vmem:[%s294_s7 + $0x8] sm:$0xff] %vm57_vm1, %v164_v49 }

// kernel: decoder_forward.19
= control target key start
LH: loop header
LB: loop body
LE: loop exit
PB: predicated region body
PF: predicated region fallthrough
CT: control target
= control target key end

     0   :  { %v113_v0 = vmov 0.0   ;;  %vm114_vm0 = vmmov 0   ;;  %vm31_vm1 = vcmask 261120   ;;  %vm84_vm2 = vcmask 257024   ;;  %s148_s1 = inlined_call_operand.vmem [shape: bf16[32,32], index: 1, kind: input, shape index: {}]   ;;  %s149_s0 = inlined_call_operand.vmem [shape: f32[16,32], index: 0, kind: input, shape index: {}]   ;;  %s150_s2 = inlined_call_operand.vmem [shape: bf16[16,32], index: 2, kind: output, shape index: {}]  }
   0x1   :  { %101 = vmatprep.subr.bf16.mxu0 %v113_v0  ;;  %v111_v1 = vld [vmem:[%s148_s1 + $0x8] sm:$0xff]   ;;  %105 = vmatprep.mubr.msk.bf16.mxu0 %vm114_vm0, %v113_v0  ;;  %v112_v2 = vld [vmem:[%s148_s1] sm:$0xff]  }
   0x2   :  { %102 = vmatpush3.bf16.msra.mxu0 %v111_v1  ;;  %v12_v3 = vld [vmem:[%s149_s0] sm:$0xff]  ;;  %v13_v4 = vld [vmem:[%s149_s0 + $0x8] sm:$0xff] }
   0x3   :  { %103 = vmatprep.subr.bf16.mxu0 %v113_v0  ;;  %v14_v5 = vpack.c.bf16 %v13_v4, %v12_v3 }
   0x6   :  { %104 = vmatpush3.bf16.msra.mxu0 %v112_v2 }
   0x9   :  { %106 = vmatmul.mubr.msk.bf16.vlgmr.msra.gmra.mxu0 %vm31_vm1, %v14_v5 }
  0xc9   :  { %v69_v6 = vpop.f32.mrf.mxu0 }
  0xca   :  { %v96_v7 = vpack.c.bf16 %v69_v6, %v69_v6 }
  0xcb   :  { %v107_v8 = vpop.f32.mrf.mxu0 }
  0xcc   :  { %85 = vst.msk [vmem:[%s150_s2] sm:$0xf] %vm84_vm2, %v96_v7 }
  0xcd   :  { %v72_v9 = vpop.f32.mrf.mxu0 }
  0xce   :  { %v97_v10 = vpack.c.bf16 %v72_v9, %v72_v9 }
  0xcf   :  { %v108_v11 = vpop.f32.mrf.mxu0 }
  0xd0   :  { %86 = vst.msk [vmem:[%s150_s2 + $0x4] sm:$0xf] %vm84_vm2, %v97_v10 }

// kernel: decoder_forward.16
= control target key start
LH: loop header
LB: loop body
LE: loop exit
PB: predicated region body
PF: predicated region fallthrough
CT: control target
= control target key end

     0   :  { %v210_v0 = vmov 0.0   ;;  %vm211_vm0 = vmmov 0   ;;  %vm36_vm1 = vcmask 261120   ;;  %vm89_vm2 = vcmask 257024   ;;  %s267_s1 = inlined_call_operand.vmem [shape: bf16[32,32], index: 1, kind: input, shape index: {}]   ;;  %s268_s2 = inlined_call_operand.vmem [shape: bf16[32,64], index: 2, kind: input, shape index: {}]   ;;  %s269_s0 = inlined_call_operand.vmem [shape: f32[16,32], index: 0, kind: input, shape index: {}]   ;;  %s270_s3 = inlined_call_operand.vmem [shape: bf16[16,32], index: 3, kind: output, shape index: {0}]   ;;  %s271_s4 = inlined_call_operand.vmem [shape: bf16[16,64], index: 4, kind: output, shape index: {1}]  }
   0x1   :  { %188 = vmatprep.subr.bf16.mxu0 %v210_v0  ;;  %196 = vmatprep.subr.bf16.mxu1 %v210_v0  ;;  %v206_v1 = vld [vmem:[%s267_s1 + $0x8] sm:$0xff]   ;;  %v208_v3 = vld [vmem:[%s267_s1] sm:$0xff]   ;;  %vm157_vm3 = vcmask 519168  }
   0x2   :  { %v207_v2 = vld [vmem:[%s268_s2 + $0x8] sm:$0xff]   ;;  %192 = vmatprep.mubr.msk.bf16.mxu0 %vm211_vm0, %v210_v0  ;;  %200 = vmatprep.mubr.msk.bf16.mxu1 %vm211_vm0, %v210_v0  ;;  %v209_v4 = vld [vmem:[%s268_s2] sm:$0xff]  }
   0x3   :  { %189 = vmatpush3.bf16.msra.mxu0 %v206_v1  ;;  %197 = vmatpush3.bf16.msra.mxu1 %v207_v2  ;;  %v17_v5 = vld [vmem:[%s269_s0] sm:$0xff]  ;;  %v18_v6 = vld [vmem:[%s269_s0 + $0x8] sm:$0xff] }
   0x4   :  { %190 = vmatprep.subr.bf16.mxu0 %v210_v0  ;;  %198 = vmatprep.subr.bf16.mxu1 %v210_v0  ;;  %v19_v7 = vpack.c.bf16 %v18_v6, %v17_v5 }
   0x7   :  { %191 = vmatpush3.bf16.msra.mxu0 %v208_v3  ;;  %199 = vmatpush3.bf16.msra.mxu1 %v209_v4 }
   0xa   :  { %193 = vmatmul.mubr.msk.bf16.vlgmr.msra.gmra.mxu0 %vm36_vm1, %v19_v7  ;;  %201 = vmatmul.mubr.msk.bf16.vlgmr.msra.gmra.mxu1 %vm36_vm1, %v19_v7 }
  0xca   :  { %v74_v8 = vpop.f32.mrf.mxu0  ;;  %v142_v10 = vpop.f32.mrf.mxu1 }
  0xcb   :  { %v178_v9 = vpack.c.bf16 %v74_v8, %v74_v8  ;;  %v180_v11 = vpack.c.bf16 %v142_v10, %v142_v10 }
  0xcc   :  { %v194_v12 = vpop.f32.mrf.mxu0  ;;  %v202_v13 = vpop.f32.mrf.mxu1 }
  0xcd   :  { %90 = vst.msk [vmem:[%s270_s3] sm:$0xf] %vm89_vm2, %v178_v9 }
  0xce   :  { %158 = vst.msk [vmem:[%s271_s4] sm:$0xf] %vm157_vm3, %v180_v11  ;;  %v77_v14 = vpop.f32.mrf.mxu0  ;;  %v145_v16 = vpop.f32.mrf.mxu1 }
  0xcf   :  { %v179_v15 = vpack.c.bf16 %v77_v14, %v77_v14  ;;  %v181_v17 = vpack.c.bf16 %v145_v16, %v145_v16 }
  0xd0   :  { %v195_v18 = vpop.f32.mrf.mxu0  ;;  %v203_v19 = vpop.f32.mrf.mxu1 }
  0xd1   :  { %91 = vst.msk [vmem:[%s270_s3 + $0x4] sm:$0xf] %vm89_vm2, %v179_v15 }
  0xd2   :  { %159 = vst.msk [vmem:[%s271_s4 + $0x4] sm:$0xf] %vm157_vm3, %v181_v17 }

// kernel: decoder_forward.17
= control target key start
LH: loop header
LB: loop body
LE: loop exit
PB: predicated region body
PF: predicated region fallthrough
CT: control target
= control target key end

     0   :  { %s931_s12 = smov 0   ;;  %s1029_s0 = inlined_call_operand.vmem [shape: bf16[2,8,32], index: 0, kind: input, shape index: {}]   ;;  %s1030_s1 = inlined_call_operand.vmem [shape: bf16[2,8,64], index: 1, kind: input, shape index: {}]   ;;  %s1031_s2 = inlined_call_operand.vmem [shape: f32[2,1,8], index: 2, kind: input, shape index: {}]   ;;  %s1032_s3 = inlined_call_operand.vmem [shape: bf16[2,8,32], index: 3, kind: output, shape index: {}]  }
   0x1 LB: > { %s762_s13 = sadd.s32 4294967295, %s897_s12   ;;  %p766_p0 = scmp.ge.s32.totalorder %s897_s12, 1  ;;  %s897_s12 = sphi %s931_s12, %s13_s12  }
   0x2   : > { %p153_p1 = scmp.lt.s32.totalorder %s897_s12, 3 }
   0x4   : > { %p154_p2 = pnand %p766_p0, %p153_p1 }
   0x5   : > { %p182_p3 = scmp.lt.s32.totalorder (!%p154_p2), %s762_s13, 1  ;;  %s901_s24 = smov (!%p154_p2), 96  }
   0x6   : > { %157 = sbr.rel (%p154_p2) target bundleno = 1376 (0x560), region = 32  ;;  %s902_s25 = smov (!%p154_p2), 120  }
   0x7   : > { %s903_s26 = smov (!%p154_p2), 112   ;;  %s904_s27 = smov (!%p154_p2), 104  }
   0x8   : > { %s905_s4 = smov (!%p154_p2), 88   ;;  %s906_s5 = smov (!%p154_p2), 72  }
   0x9   : > { %s907_s6 = smov (!%p154_p2), 80   ;;  %s908_s7 = smov (!%p154_p2), 8  }
   0xa   : > { %s909_s8 = smov (!%p154_p2), 16   ;;  %s910_s9 = smov (!%p154_p2), 24  }
   0xb   : > { %v899_v0 = vmov 0.0   ;;  %vm900_vm0 = vmmov 0   ;;  %s1034_s13 = smov (!%p182_p3, %s762_s13), 1  ;;  %vm214_vm1 = vcmask 64512   ;;  %v201_v4 = vlaneseq }
   0xc   : > { %805 = vmatprep.subr.bf16.mxu0 %v899_v0  ;;  %807 = vmatprep.mubr.msk.bf16.mxu0 %vm900_vm0, %v899_v0  ;;  %s945_s14 = sshll.u32 %s1034_s13, 2  ;;  %s192_s23 = scalar_lea.vmem %s1031_s2, %s1034_s13  ;;  %vm281_vm3 = vcmask 1043456   ;;  %vm326_vm4 = vcmask 60416   ;;  %vm448_vm5 = vcmask 126016   ;;  %vm567_vm6 = vcmask 191616  }
   0xd   : > { %811 = vmatprep.subr.bf16.mxu1 %v899_v0  ;;  %813 = vmatprep.mubr.msk.bf16.mxu1 %vm900_vm0, %v899_v0  ;;  %s189_s17 = scalar_lea.vmem %s1030_s1, %s945_s14  ;;  %s185_s20 = scalar_lea.vmem %s1029_s0, %s945_s14  ;;  %v202_v5 = vshrl.u32 %v201_v4, 7  ;;  %v204_v6 = vand.u32 127, %v201_v4  ;;  %v770_v7 = vld [vmem:[%s192_s23] ss:$0 sm:$0xff]  ;;  %vm686_vm7 = vcmask 257216  }
   0xe   : > { %v199_v1 = vld [vmem:[%s189_s17] sm:$0xf]  ;;  %s996_s30 = scalar_lea.vmem %s1032_s3, %s945_s14 }
   0xf   : > { %v219_v2 = vsel %vm214_vm1, %v199_v1, 0  ;;  %v198_v3 = vld [vmem:[%s185_s20] sm:$0xf]  ;;  %vm205_vm2 = vcmp.gt.s32.totalorder %v204_v6, %v202_v5  ;;  %v968_v16 = vcombine.low %v199_v1, %v199_v1 }
  0x10   : > { %806 = vmatpush3.bf16.xpose.msra.mxu0 %v219_v2  ;;  %v206_v8 = vsel %vm205_vm2, -1e+09, %v899_v0  ;;  %v774_v17 = vcombine.low %v198_v3, %v198_v3 }
  0x11   : > { %823 = vmatprep.subr.bf16.mxu0 %v899_v0  ;;  %v964_v9 = vadd.f32 %v770_v7, %v206_v8  ;;  %276 = vrot.lane.b32.xlu1 %v968_v16, %s901_s24 }
  0x15   : > { %333 = vrot.lane.b32.xlu1 %v968_v16, %s902_s25 }
  0x17   : > { %808 = vmatmul.mubr.msk.bf16.vlgmr.msra.gmra.mxu0 %vm214_vm1, %v198_v3 }
  0x18   : > { %825 = vmatprep.mubr.msk.bf16.mxu0 %vm900_vm0, %v899_v0 }
  0x19   : > { %452 = vrot.lane.b32.xlu1 %v968_v16, %s903_s26 }
  0x1d   : > { %450 = vrot.lane.b32.xlu1 %v774_v17, %s903_s26 }
  0x21   : > { %571 = vrot.lane.b32.xlu1 %v968_v16, %s904_s27 }
  0x25   : > { %569 = vrot.lane.b32.xlu1 %v774_v17, %s904_s27 }
  0x83   : > { %v277_v23 = vpop.permute.xlu1 %276 }
  0x84   : > { %v283_v24 = vsel %vm281_vm3, %v277_v23, 0 }
  0x85   : > { %812 = vmatpush3.bf16.msra.mxu1 %v283_v24 }
  0x86   : > { %817 = vmatprep.subr.bf16.mxu1 %v899_v0 }
  0x87   : > { %v334_v27 = vpop.permute.xlu1 %333 }
  0x88   : > { %v339_v29 = vsel %vm214_vm1, %v334_v27, 0 }
  0x8b   : > { %v453_v31 = vpop.permute.xlu1 %452 }
  0x8c   : > { %v458_v34 = vsel %vm214_vm1, %v453_v31, 0 }
  0x8f   : > { %v451_v33 = vpop.permute.xlu1 %450 }
  0x93   : > { %v572_v35 = vpop.permute.xlu1 %571 }
  0x94   : > { %v577_v36 = vsel %vm214_vm1, %v572_v35, 0 }
  0x97   : > { %v570_v37 = vpop.permute.xlu1 %569 }
  0xd7   : > { %v255_v10 = vpop.f32.mrf.mxu0 }
  0xd8   : > { %v256_v11 = vadd.f32 %v255_v10, %v964_v9 }
  0xd9   : > { %v809_v12 = vpop.f32.mrf.mxu0 }
  0xda   : > { %v261_v13 = vsel %vm214_vm1, %v256_v11, -inf }
  0xdb   : > { %262 = vmax.xlane.f32.xlu0 %v261_v13  ;;  %v258_v14 = vpop.f32.mrf.mxu0 }
  0xdd   : > { %v810_v15 = vpop.f32.mrf.mxu0 }
 0x164   : > { %v263_v18 = vpop.xlane.xlu0 %262 }
 0x165   : > { %v264_v19 = vsub.f32 %v256_v11, %v263_v18 }
 0x167   : > { %v265_v20 = vmul.f32 1.442695, %v264_v19 }
 0x169   : > { %875 = vpow2.f32 %v265_v20 }
 0x176   : > { %v876_v21 = vpop.eup %875 }
 0x177   : > { %v267_v22 = vsel %vm214_vm1, %v876_v21, 0.0 }
 0x178   : > { %268 = vadd.xlane.f32.xlu0 %v267_v22 }
 0x18e   : > { %331 = vrot.lane.b32.xlu0 %v774_v17, %s902_s25 }
 0x201   : > { %v269_v25 = vpop.xlane.xlu0 %268 }
 0x202   : > { %877 = vrcp.f32 %v269_v25 }
 0x205   : > { %v332_v32 = vpop.permute.xlu0 %331 }
 0x20f   : > { %v878_v26 = vpop.eup %877 }
 0x210   : > { %v271_v28 = vmul.f32 %v878_v26, %v876_v21 }
 0x212   : > { %v272_v30 = vpack.c.bf16 %v271_v28, %v271_v28 }
 0x214   : > { %814 = vmatmul.mubr.msk.bf16.vlgmr.msra.gmra.mxu1 %vm214_vm1, %v272_v30 }
 0x215   : > { %818 = vmatpush3.bf16.xpose.msra.mxu1 %v339_v29  ;;  %819 = vmatprep.mubr.msk.bf16.mxu1 %vm900_vm0, %v899_v0 }
 0x216   : > { %829 = vmatprep.subr.bf16.mxu1 %v899_v0 }
 0x21c   : > { %820 = vmatmul.mubr.msk.bf16.vlgmr.msra.gmra.mxu1 %vm214_vm1, %v332_v32 }
 0x21d   : > { %830 = vmatpush3.bf16.xpose.msra.mxu1 %v458_v34  ;;  %831 = vmatprep.mubr.msk.bf16.mxu1 %vm900_vm0, %v899_v0 }
 0x21e   : > { %841 = vmatprep.subr.bf16.mxu1 %v899_v0 }
 0x224   : > { %832 = vmatmul.mubr.msk.bf16.vlgmr.msra.gmra.mxu1 %vm214_vm1, %v451_v33 }
 0x225   : > { %842 = vmatpush3.bf16.xpose.msra.mxu1 %v577_v36  ;;  %843 = vmatprep.mubr.msk.bf16.mxu1 %vm900_vm0, %v899_v0 }
 0x22c   : > { %844 = vmatmul.mubr.msk.bf16.vlgmr.msra.gmra.mxu1 %vm214_vm1, %v570_v37 }
 0x2d4   : > { %v319_v38 = vpop.f32.mrf.mxu1 }
 0x2d5   : > { %v325_v39 = vpack.c.bf16 %v319_v38, %v319_v38 }
 0x2d6   : > { %v815_v40 = vpop.f32.mrf.mxu1 }
 0x2d7   : > { %327 = vst.msk [vmem:[%s996_s30] sm:$0xf] %vm326_vm4, %v325_v39 }
 0x2d8   : > { %v322_v41 = vpop.f32.mrf.mxu1 }
 0x2da   : > { %v816_v42 = vpop.f32.mrf.mxu1 }
 0x2dc   : > { %v375_v43 = vpop.f32.mrf.mxu1 }
 0x2dd   : > { %v376_v44 = vadd.f32 %v375_v43, %v964_v9 }
 0x2de   : > { %v821_v45 = vpop.f32.mrf.mxu1 }
 0x2df   : > { %v381_v46 = vsel %vm214_vm1, %v376_v44, -inf }
 0x2e0   : > { %382 = vmax.xlane.f32.xlu1 %v381_v46  ;;  %v378_v47 = vpop.f32.mrf.mxu1 }
 0x2e2   : > { %v822_v48 = vpop.f32.mrf.mxu1 }
 0x2e4   : > { %v494_v49 = vpop.f32.mrf.mxu1 }
 0x2e5   : > { %v495_v50 = vadd.f32 %v494_v49, %v964_v9 }
 0x2e6   : > { %v833_v51 = vpop.f32.mrf.mxu1 }
 0x2e7   : > { %v500_v52 = vsel %vm214_vm1, %v495_v50, -inf }
 0x2e8   : > { %501 = vmax.xlane.f32.xlu0 %v500_v52  ;;  %v497_v53 = vpop.f32.mrf.mxu1 }
 0x2ea   : > { %v834_v54 = vpop.f32.mrf.mxu1 }
 0x2ec   : > { %v613_v55 = vpop.f32.mrf.mxu1 }
 0x2ed   : > { %v614_v56 = vadd.f32 %v613_v55, %v964_v9 }
 0x2ee   : > { %v845_v57 = vpop.f32.mrf.mxu1 }
 0x2ef   : > { %v619_v58 = vsel %vm214_vm1, %v614_v56, -inf }
 0x2f0   : > { %620 = vmax.xlane.f32.xlu1 %v619_v58  ;;  %v616_v59 = vpop.f32.mrf.mxu1 }
 0x2f2   : > { %v846_v60 = vpop.f32.mrf.mxu1 }
 0x301   : > { %393 = vrot.lane.b32.xlu1 %v968_v16, %s905_s4 }
 0x369   : > { %v383_v61 = vpop.xlane.xlu1 %382 }
 0x36a   : > { %v384_v62 = vsub.f32 %v376_v44, %v383_v61 }
 0x36c   : > { %v385_v63 = vmul.f32 1.442695, %v384_v62 }
 0x36e   : > { %879 = vpow2.f32 %v385_v63 }
 0x371   : > { %v502_v1 = vpop.xlane.xlu0 %501 }
 0x372   : > { %v503_v2 = vsub.f32 %v495_v50, %v502_v1 }
 0x374   : > { %v504_v3 = vmul.f32 1.442695, %v503_v2 }
 0x376   : > { %881 = vpow2.f32 %v504_v3 }
 0x379   : > { %v621_v4 = vpop.xlane.xlu1 %620 }
 0x37a   : > { %v622_v5 = vsub.f32 %v614_v56, %v621_v4 }
 0x37b   : > { %v880_v6 = vpop.eup %879 }
 0x37c   : > { %v623_v7 = vmul.f32 1.442695, %v622_v5  ;;  %v387_v8 = vsel %vm214_vm1, %v880_v6, 0.0 }
 0x37d   : > { %388 = vadd.xlane.f32.xlu0 %v387_v8  ;;  %v394_v9 = vpop.permute.xlu1 %393 }
 0x37e   : > { %883 = vpow2.f32 %v623_v7  ;;  %v399_v10 = vsel %vm281_vm3, %v394_v9, 0 }
 0x37f   : > { %824 = vmatpush3.bf16.msra.mxu0 %v399_v10 }
 0x380   : > { %835 = vmatprep.subr.bf16.mxu0 %v899_v0 }
 0x383   : > { %v882_v11 = vpop.eup %881 }
 0x384   : > { %v506_v12 = vsel %vm214_vm1, %v882_v11, 0.0 }
 0x385   : > { %507 = vadd.xlane.f32.xlu1 %v506_v12 }
 0x38b   : > { %v884_v13 = vpop.eup %883 }
 0x38c   : > { %v625_v14 = vsel %vm214_vm1, %v884_v13, 0.0 }
 0x38d   : > { %626 = vadd.xlane.f32.xlu0 %v625_v14 }
 0x396   : > { %631 = vrot.lane.b32.xlu1 %v968_v16, %s906_s5 }
 0x3a3   : > { %512 = vrot.lane.b32.xlu0 %v968_v16, %s907_s6 }
 0x406   : > { %v389_v15 = vpop.xlane.xlu0 %388 }
 0x407   : > { %885 = vrcp.f32 %v389_v15 }
 0x40e   : > { %v508_v17 = vpop.xlane.xlu1 %507 }
 0x40f   : > { %887 = vrcp.f32 %v508_v17 }
 0x412   : > { %v632_v16 = vpop.permute.xlu1 %631 }
 0x413   : > { %v637_v27 = vsel %vm281_vm3, %v632_v16, 0 }
 0x414   : > { %v886_v18 = vpop.eup %885 }
 0x415   : > { %v391_v19 = vmul.f32 %v886_v18, %v880_v6 }
 0x416   : > { %v627_v20 = vpop.xlane.xlu0 %626 }
 0x417   : > { %889 = vrcp.f32 %v627_v20  ;;  %v392_v21 = vpack.c.bf16 %v391_v19, %v391_v19 }
 0x419   : > { %826 = vmatmul.mubr.msk.bf16.vlgmr.msra.gmra.mxu0 %vm214_vm1, %v392_v21 }
 0x41a   : > { %v513_v22 = vpop.permute.xlu0 %512  ;;  %837 = vmatprep.mubr.msk.bf16.mxu0 %vm900_vm0, %v899_v0 }
 0x41b   : > { %v518_v23 = vsel %vm281_vm3, %v513_v22, 0 }
 0x41c   : > { %v888_v24 = vpop.eup %887  ;;  %836 = vmatpush3.bf16.msra.mxu0 %v518_v23 }
 0x41d   : > { %v510_v25 = vmul.f32 %v888_v24, %v882_v11  ;;  %847 = vmatprep.subr.bf16.mxu0 %v899_v0 }
 0x41f   : > { %v511_v26 = vpack.c.bf16 %v510_v25, %v510_v25 }
 0x421   : > { %838 = vmatmul.mubr.msk.bf16.vlgmr.msra.gmra.mxu0 %vm214_vm1, %v511_v26 }
 0x422   : > { %848 = vmatpush3.bf16.msra.mxu0 %v637_v27  ;;  %849 = vmatprep.mubr.msk.bf16.mxu0 %vm900_vm0, %v899_v0 }
 0x424   : > { %v890_v28 = vpop.eup %889 }
 0x425   : > { %v629_v29 = vmul.f32 %v890_v28, %v884_v13 }
 0x427   : > { %v630_v30 = vpack.c.bf16 %v629_v29, %v629_v29 }
 0x429   : > { %850 = vmatmul.mubr.msk.bf16.vlgmr.msra.gmra.mxu0 %vm214_vm1, %v630_v30 }
 0x4d9   : > { %v435_v31 = vpop.f32.mrf.mxu0 }
 0x4da   : > { %v786_v32 = vpack.c.bf16 %v435_v31, %v435_v31 }
 0x4db   : > { %v827_v33 = vpop.f32.mrf.mxu0 }
 0x4dc   : > { %445 = vrot.lane.b32.xlu1 %v786_v32, %s908_s7 }
 0x4dd   : > { %v438_v34 = vpop.f32.mrf.mxu0 }
 0x4df   : > { %v828_v35 = vpop.f32.mrf.mxu0 }
 0x4e1   : > { %v554_v36 = vpop.f32.mrf.mxu0 }
 0x4e2   : > { %v787_v37 = vpack.c.bf16 %v554_v36, %v554_v36 }
 0x4e3   : > { %v839_v38 = vpop.f32.mrf.mxu0 }
 0x4e4   : > { %564 = vrot.lane.b32.xlu0 %v787_v37, %s909_s8 }
 0x4e5   : > { %v557_v0 = vpop.f32.mrf.mxu0 }
 0x4e7   : > { %v840_v39 = vpop.f32.mrf.mxu0 }
 0x4e9   : > { %v673_v40 = vpop.f32.mrf.mxu0 }
 0x4ea   : > { %v788_v41 = vpack.c.bf16 %v673_v40, %v673_v40 }
 0x4eb   : > { %v851_v42 = vpop.f32.mrf.mxu0 }
 0x4ec   : > { %683 = vrot.lane.b32.xlu1 %v788_v41, %s910_s9 }
 0x4ed   : > { %v676_v43 = vpop.f32.mrf.mxu0 }
 0x4ef   : > { %v852_v44 = vpop.f32.mrf.mxu0 }
 0x54e   : > { %v446_v45 = vpop.permute.xlu1 %445 }
 0x54f   : > { %449 = vst.msk [vmem:[%s996_s30] sm:$0xf] %vm448_vm5, %v446_v45 }
 0x556   : > { %v565_v46 = vpop.permute.xlu0 %564 }
 0x557   : > { %568 = vst.msk [vmem:[%s996_s30] sm:$0xf] %vm567_vm6, %v565_v46 }
 0x55e   : > { %v684_v47 = vpop.permute.xlu1 %683 }
 0x55f   : > { %687 = vst.msk [vmem:[%s996_s30] sm:$0xf] %vm686_vm7, %v684_v47 }
 0x560 PF: > { %s13_s12 = sadd.s32 1, %s897_s12  }
 0x561   : > { %p10_p4 = scmp.ge.s32.totalorder %s13_s12, 4  }
 0x563   :  { %12 = sbr.rel (!%p10_p4) target bundleno = 1 (0x1), region = 68 }

// kernel: decoder_forward.20
= control target key start
LH: loop header
LB: loop body
LE: loop exit
PB: predicated region body
PF: predicated region fallthrough
CT: control target
= control target key end

     0   :  { %v113_v0 = vmov 0.0   ;;  %vm114_vm0 = vmmov 0   ;;  %vm31_vm1 = vcmask 261120   ;;  %vm84_vm2 = vcmask 519168   ;;  %s148_s1 = inlined_call_operand.vmem [shape: bf16[32,64], index: 1, kind: input, shape index: {}]   ;;  %s149_s0 = inlined_call_operand.vmem [shape: f32[16,32], index: 0, kind: input, shape index: {}]   ;;  %s150_s2 = inlined_call_operand.vmem [shape: bf16[16,64], index: 2, kind: output, shape index: {}]  }
   0x1   :  { %101 = vmatprep.subr.bf16.mxu0 %v113_v0  ;;  %v111_v1 = vld [vmem:[%s148_s1 + $0x8] sm:$0xff]   ;;  %105 = vmatprep.mubr.msk.bf16.mxu0 %vm114_vm0, %v113_v0  ;;  %v112_v2 = vld [vmem:[%s148_s1] sm:$0xff]  }
   0x2   :  { %102 = vmatpush3.bf16.msra.mxu0 %v111_v1  ;;  %v12_v3 = vld [vmem:[%s149_s0] sm:$0xff]  ;;  %v13_v4 = vld [vmem:[%s149_s0 + $0x8] sm:$0xff] }
   0x3   :  { %103 = vmatprep.subr.bf16.mxu0 %v113_v0  ;;  %v14_v5 = vpack.c.bf16 %v13_v4, %v12_v3 }
   0x6   :  { %104 = vmatpush3.bf16.msra.mxu0 %v112_v2 }
   0x9   :  { %106 = vmatmul.mubr.msk.bf16.vlgmr.msra.gmra.mxu0 %vm31_vm1, %v14_v5 }
  0xc9   :  { %v69_v6 = vpop.f32.mrf.mxu0 }
  0xca   :  { %v96_v7 = vpack.c.bf16 %v69_v6, %v69_v6 }
  0xcb   :  { %v107_v8 = vpop.f32.mrf.mxu0 }
  0xcc   :  { %85 = vst.msk [vmem:[%s150_s2] sm:$0xf] %vm84_vm2, %v96_v7 }
  0xcd   :  { %v72_v9 = vpop.f32.mrf.mxu0 }
  0xce   :  { %v97_v10 = vpack.c.bf16 %v72_v9, %v72_v9 }
  0xcf   :  { %v108_v11 = vpop.f32.mrf.mxu0 }
  0xd0   :  { %86 = vst.msk [vmem:[%s150_s2 + $0x4] sm:$0xf] %vm84_vm2, %v97_v10 }

// kernel: decoder_forward.21
= control target key start
LH: loop header
LB: loop body
LE: loop exit
PB: predicated region body
PF: predicated region fallthrough
CT: control target
= control target key end

     0   :  { %s924_s12 = smov 0   ;;  %s1021_s0 = inlined_call_operand.vmem [shape: bf16[2,8,32], index: 0, kind: input, shape index: {}]   ;;  %s1022_s1 = inlined_call_operand.vmem [shape: bf16[2,8,64], index: 1, kind: input, shape index: {}]   ;;  %s1023_s2 = inlined_call_operand.vmem [shape: f32[2,1,8], index: 2, kind: input, shape index: {}]   ;;  %s1024_s3 = inlined_call_operand.vmem [shape: bf16[2,8,32], index: 3, kind: output, shape index: {}]  }
   0x1 LB: > { %s755_s13 = sadd.s32 4294967295, %s890_s12   ;;  %p759_p0 = scmp.ge.s32.totalorder %s890_s12, 1  ;;  %s890_s12 = sphi %s924_s12, %s13_s12  }
   0x2   : > { %p153_p1 = scmp.lt.s32.totalorder %s890_s12, 3 }
   0x4   : > { %p154_p2 = pnand %p759_p0, %p153_p1 }
   0x5   : > { %p182_p3 = scmp.lt.s32.totalorder (!%p154_p2), %s755_s13, 1  ;;  %s894_s24 = smov (!%p154_p2), 96  }
   0x6   : > { %157 = sbr.rel (%p154_p2) target bundleno = 1376 (0x560), region = 32  ;;  %s895_s25 = smov (!%p154_p2), 120  }
   0x7   : > { %s896_s26 = smov (!%p154_p2), 112   ;;  %s897_s27 = smov (!%p154_p2), 104  }
   0x8   : > { %s898_s4 = smov (!%p154_p2), 88   ;;  %s899_s5 = smov (!%p154_p2), 72  }
   0x9   : > { %s900_s6 = smov (!%p154_p2), 80   ;;  %s901_s7 = smov (!%p154_p2), 8  }
   0xa   : > { %s902_s8 = smov (!%p154_p2), 16   ;;  %s903_s9 = smov (!%p154_p2), 24  }
   0xb   : > { %v892_v0 = vmov 0.0   ;;  %vm893_vm0 = vmmov 0   ;;  %s1026_s13 = smov (!%p182_p3, %s755_s13), 1  ;;  %vm207_vm1 = vcmask 64512   ;;  %vm274_vm2 = vcmask 1043456  }
   0xc   : > { %798 = vmatprep.subr.bf16.mxu0 %v892_v0  ;;  %800 = vmatprep.mubr.msk.bf16.mxu0 %vm893_vm0, %v892_v0  ;;  %s938_s14 = sshll.u32 %s1026_s13, 2  ;;  %s192_s23 = scalar_lea.vmem %s1023_s2, %s1026_s13  ;;  %vm319_vm3 = vcmask 60416   ;;  %vm441_vm4 = vcmask 126016   ;;  %vm560_vm5 = vcmask 191616   ;;  %vm679_vm6 = vcmask 257216  }
   0xd   : > { %804 = vmatprep.subr.bf16.mxu1 %v892_v0  ;;  %806 = vmatprep.mubr.msk.bf16.mxu1 %vm893_vm0, %v892_v0  ;;  %s189_s17 = scalar_lea.vmem %s1022_s1, %s938_s14  ;;  %s185_s20 = scalar_lea.vmem %s1021_s0, %s938_s14  ;;  %v956_v4 = vld [vmem:[%s192_s23] ss:$0 sm:$0xff] }
   0xe   : > { %v199_v1 = vld [vmem:[%s189_s17] sm:$0xf]  ;;  %s988_s30 = scalar_lea.vmem %s1024_s3, %s938_s14 }
   0xf   : > { %v212_v2 = vsel %vm207_vm1, %v199_v1, 0  ;;  %v198_v3 = vld [vmem:[%s185_s20] sm:$0xf]  ;;  %v960_v11 = vcombine.low %v199_v1, %v199_v1 }
  0x10   : > { %799 = vmatpush3.bf16.xpose.msra.mxu0 %v212_v2  ;;  %v767_v12 = vcombine.low %v198_v3, %v198_v3 }
  0x11   : > { %816 = vmatprep.subr.bf16.mxu0 %v892_v0  ;;  %269 = vrot.lane.b32.xlu1 %v960_v11, %s894_s24 }
  0x15   : > { %326 = vrot.lane.b32.xlu1 %v960_v11, %s895_s25 }
  0x17   : > { %801 = vmatmul.mubr.msk.bf16.vlgmr.msra.gmra.mxu0 %vm207_vm1, %v198_v3 }
  0x18   : > { %818 = vmatprep.mubr.msk.bf16.mxu0 %vm893_vm0, %v892_v0 }
  0x19   : > { %445 = vrot.lane.b32.xlu1 %v960_v11, %s896_s26 }
  0x1d   : > { %443 = vrot.lane.b32.xlu1 %v767_v12, %s896_s26 }
  0x21   : > { %564 = vrot.lane.b32.xlu1 %v960_v11, %s897_s27 }
  0x25   : > { %562 = vrot.lane.b32.xlu1 %v767_v12, %s897_s27 }
  0x83   : > { %v270_v18 = vpop.permute.xlu1 %269 }
  0x84   : > { %v276_v19 = vsel %vm274_vm2, %v270_v18, 0 }
  0x85   : > { %805 = vmatpush3.bf16.msra.mxu1 %v276_v19 }
  0x86   : > { %810 = vmatprep.subr.bf16.mxu1 %v892_v0 }
  0x87   : > { %v327_v22 = vpop.permute.xlu1 %326 }
  0x88   : > { %v332_v24 = vsel %vm207_vm1, %v327_v22, 0 }
  0x8b   : > { %v446_v26 = vpop.permute.xlu1 %445 }
  0x8c   : > { %v451_v29 = vsel %vm207_vm1, %v446_v26, 0 }
  0x8f   : > { %v444_v28 = vpop.permute.xlu1 %443 }
  0x93   : > { %v565_v30 = vpop.permute.xlu1 %564 }
  0x94   : > { %v570_v31 = vsel %vm207_vm1, %v565_v30, 0 }
  0x97   : > { %v563_v32 = vpop.permute.xlu1 %562 }
  0xd7   : > { %v248_v5 = vpop.f32.mrf.mxu0 }
  0xd8   : > { %v249_v6 = vadd.f32 %v956_v4, %v248_v5 }
  0xd9   : > { %v802_v7 = vpop.f32.mrf.mxu0 }
  0xda   : > { %v254_v8 = vsel %vm207_vm1, %v249_v6, -inf }
  0xdb   : > { %255 = vmax.xlane.f32.xlu0 %v254_v8  ;;  %v251_v9 = vpop.f32.mrf.mxu0 }
  0xdd   : > { %v803_v10 = vpop.f32.mrf.mxu0 }
 0x164   : > { %v256_v13 = vpop.xlane.xlu0 %255 }
 0x165   : > { %v257_v14 = vsub.f32 %v249_v6, %v256_v13 }
 0x167   : > { %v258_v15 = vmul.f32 1.442695, %v257_v14 }
 0x169   : > { %868 = vpow2.f32 %v258_v15 }
 0x176   : > { %v869_v16 = vpop.eup %868 }
 0x177   : > { %v260_v17 = vsel %vm207_vm1, %v869_v16, 0.0 }
 0x178   : > { %261 = vadd.xlane.f32.xlu0 %v260_v17 }
 0x18e   : > { %324 = vrot.lane.b32.xlu0 %v767_v12, %s895_s25 }
 0x201   : > { %v262_v20 = vpop.xlane.xlu0 %261 }
 0x202   : > { %870 = vrcp.f32 %v262_v20 }
 0x205   : > { %v325_v27 = vpop.permute.xlu0 %324 }
 0x20f   : > { %v871_v21 = vpop.eup %870 }
 0x210   : > { %v264_v23 = vmul.f32 %v871_v21, %v869_v16 }
 0x212   : > { %v265_v25 = vpack.c.bf16 %v264_v23, %v264_v23 }
 0x214   : > { %807 = vmatmul.mubr.msk.bf16.vlgmr.msra.gmra.mxu1 %vm207_vm1, %v265_v25 }
 0x215   : > { %811 = vmatpush3.bf16.xpose.msra.mxu1 %v332_v24  ;;  %812 = vmatprep.mubr.msk.bf16.mxu1 %vm893_vm0, %v892_v0 }
 0x216   : > { %822 = vmatprep.subr.bf16.mxu1 %v892_v0 }
 0x21c   : > { %813 = vmatmul.mubr.msk.bf16.vlgmr.msra.gmra.mxu1 %vm207_vm1, %v325_v27 }
 0x21d   : > { %823 = vmatpush3.bf16.xpose.msra.mxu1 %v451_v29  ;;  %824 = vmatprep.mubr.msk.bf16.mxu1 %vm893_vm0, %v892_v0 }
 0x21e   : > { %834 = vmatprep.subr.bf16.mxu1 %v892_v0 }
 0x224   : > { %825 = vmatmul.mubr.msk.bf16.vlgmr.msra.gmra.mxu1 %vm207_vm1, %v444_v28 }
 0x225   : > { %835 = vmatpush3.bf16.xpose.msra.mxu1 %v570_v31  ;;  %836 = vmatprep.mubr.msk.bf16.mxu1 %vm893_vm0, %v892_v0 }
 0x22c   : > { %837 = vmatmul.mubr.msk.bf16.vlgmr.msra.gmra.mxu1 %vm207_vm1, %v563_v32 }
 0x2d4   : > { %v312_v33 = vpop.f32.mrf.mxu1 }
 0x2d5   : > { %v318_v34 = vpack.c.bf16 %v312_v33, %v312_v33 }
 0x2d6   : > { %v808_v35 = vpop.f32.mrf.mxu1 }
 0x2d7   : > { %320 = vst.msk [vmem:[%s988_s30] sm:$0xf] %vm319_vm3, %v318_v34 }
 0x2d8   : > { %v315_v36 = vpop.f32.mrf.mxu1 }
 0x2da   : > { %v809_v37 = vpop.f32.mrf.mxu1 }
 0x2dc   : > { %v368_v38 = vpop.f32.mrf.mxu1 }
 0x2dd   : > { %v369_v39 = vadd.f32 %v956_v4, %v368_v38 }
 0x2de   : > { %v814_v40 = vpop.f32.mrf.mxu1 }
 0x2df   : > { %v374_v41 = vsel %vm207_vm1, %v369_v39, -inf }
 0x2e0   : > { %375 = vmax.xlane.f32.xlu1 %v374_v41  ;;  %v371_v42 = vpop.f32.mrf.mxu1 }
 0x2e2   : > { %v815_v43 = vpop.f32.mrf.mxu1 }
 0x2e4   : > { %v487_v44 = vpop.f32.mrf.mxu1 }
 0x2e5   : > { %v488_v45 = vadd.f32 %v956_v4, %v487_v44 }
 0x2e6   : > { %v826_v46 = vpop.f32.mrf.mxu1 }
 0x2e7   : > { %v493_v47 = vsel %vm207_vm1, %v488_v45, -inf }
 0x2e8   : > { %494 = vmax.xlane.f32.xlu0 %v493_v47  ;;  %v490_v48 = vpop.f32.mrf.mxu1 }
 0x2ea   : > { %v827_v49 = vpop.f32.mrf.mxu1 }
 0x2ec   : > { %v606_v50 = vpop.f32.mrf.mxu1 }
 0x2ed   : > { %v607_v51 = vadd.f32 %v956_v4, %v606_v50 }
 0x2ee   : > { %v838_v52 = vpop.f32.mrf.mxu1 }
 0x2ef   : > { %v612_v53 = vsel %vm207_vm1, %v607_v51, -inf }
 0x2f0   : > { %613 = vmax.xlane.f32.xlu1 %v612_v53  ;;  %v609_v54 = vpop.f32.mrf.mxu1 }
 0x2f2   : > { %v839_v55 = vpop.f32.mrf.mxu1 }
 0x301   : > { %386 = vrot.lane.b32.xlu1 %v960_v11, %s898_s4 }
 0x369   : > { %v376_v56 = vpop.xlane.xlu1 %375 }
 0x36a   : > { %v377_v57 = vsub.f32 %v369_v39, %v376_v56 }
 0x36c   : > { %v378_v58 = vmul.f32 1.442695, %v377_v57 }
 0x36e   : > { %872 = vpow2.f32 %v378_v58 }
 0x371   : > { %v495_v59 = vpop.xlane.xlu0 %494 }
 0x372   : > { %v496_v60 = vsub.f32 %v488_v45, %v495_v59 }
 0x374   : > { %v497_v61 = vmul.f32 1.442695, %v496_v60 }
 0x376   : > { %874 = vpow2.f32 %v497_v61 }
 0x379   : > { %v614_v62 = vpop.xlane.xlu1 %613 }
 0x37a   : > { %v615_v63 = vsub.f32 %v607_v51, %v614_v62 }
 0x37b   : > { %v873_v1 = vpop.eup %872 }
 0x37c   : > { %v616_v2 = vmul.f32 1.442695, %v615_v63  ;;  %v380_v3 = vsel %vm207_vm1, %v873_v1, 0.0 }
 0x37d   : > { %381 = vadd.xlane.f32.xlu0 %v380_v3  ;;  %v387_v4 = vpop.permute.xlu1 %386 }
 0x37e   : > { %876 = vpow2.f32 %v616_v2  ;;  %v392_v5 = vsel %vm274_vm2, %v387_v4, 0 }
 0x37f   : > { %817 = vmatpush3.bf16.msra.mxu0 %v392_v5 }
 0x380   : > { %828 = vmatprep.subr.bf16.mxu0 %v892_v0 }
 0x383   : > { %v875_v6 = vpop.eup %874 }
 0x384   : > { %v499_v7 = vsel %vm207_vm1, %v875_v6, 0.0 }
 0x385   : > { %500 = vadd.xlane.f32.xlu1 %v499_v7 }
 0x38b   : > { %v877_v8 = vpop.eup %876 }
 0x38c   : > { %v618_v9 = vsel %vm207_vm1, %v877_v8, 0.0 }
 0x38d   : > { %619 = vadd.xlane.f32.xlu0 %v618_v9 }
 0x396   : > { %624 = vrot.lane.b32.xlu1 %v960_v11, %s899_s5 }
 0x3a3   : > { %505 = vrot.lane.b32.xlu0 %v960_v11, %s900_s6 }
 0x406   : > { %v382_v10 = vpop.xlane.xlu0 %381 }
 0x407   : > { %878 = vrcp.f32 %v382_v10 }
 0x40e   : > { %v501_v12 = vpop.xlane.xlu1 %500 }
 0x40f   : > { %880 = vrcp.f32 %v501_v12 }
 0x412   : > { %v625_v11 = vpop.permute.xlu1 %624 }
 0x413   : > { %v630_v22 = vsel %vm274_vm2, %v625_v11, 0 }
 0x414   : > { %v879_v13 = vpop.eup %878 }
 0x415   : > { %v384_v14 = vmul.f32 %v879_v13, %v873_v1 }
 0x416   : > { %v620_v15 = vpop.xlane.xlu0 %619 }
 0x417   : > { %882 = vrcp.f32 %v620_v15  ;;  %v385_v16 = vpack.c.bf16 %v384_v14, %v384_v14 }
 0x419   : > { %819 = vmatmul.mubr.msk.bf16.vlgmr.msra.gmra.mxu0 %vm207_vm1, %v385_v16 }
 0x41a   : > { %v506_v17 = vpop.permute.xlu0 %505  ;;  %830 = vmatprep.mubr.msk.bf16.mxu0 %vm893_vm0, %v892_v0 }
 0x41b   : > { %v511_v18 = vsel %vm274_vm2, %v506_v17, 0 }
 0x41c   : > { %v881_v19 = vpop.eup %880  ;;  %829 = vmatpush3.bf16.msra.mxu0 %v511_v18 }
 0x41d   : > { %v503_v20 = vmul.f32 %v881_v19, %v875_v6  ;;  %840 = vmatprep.subr.bf16.mxu0 %v892_v0 }
 0x41f   : > { %v504_v21 = vpack.c.bf16 %v503_v20, %v503_v20 }
 0x421   : > { %831 = vmatmul.mubr.msk.bf16.vlgmr.msra.gmra.mxu0 %vm207_vm1, %v504_v21 }
 0x422   : > { %841 = vmatpush3.bf16.msra.mxu0 %v630_v22  ;;  %842 = vmatprep.mubr.msk.bf16.mxu0 %vm893_vm0, %v892_v0 }
 0x424   : > { %v883_v23 = vpop.eup %882 }
 0x425   : > { %v622_v24 = vmul.f32 %v883_v23, %v877_v8 }
 0x427   : > { %v623_v25 = vpack.c.bf16 %v622_v24, %v622_v24 }
 0x429   : > { %843 = vmatmul.mubr.msk.bf16.vlgmr.msra.gmra.mxu0 %vm207_vm1, %v623_v25 }
 0x4d9   : > { %v428_v26 = vpop.f32.mrf.mxu0 }
 0x4da   : > { %v779_v27 = vpack.c.bf16 %v428_v26, %v428_v26 }
 0x4db   : > { %v820_v28 = vpop.f32.mrf.mxu0 }
 0x4dc   : > { %438 = vrot.lane.b32.xlu1 %v779_v27, %s901_s7 }
 0x4dd   : > { %v431_v29 = vpop.f32.mrf.mxu0 }
 0x4df   : > { %v821_v30 = vpop.f32.mrf.mxu0 }
 0x4e1   : > { %v547_v31 = vpop.f32.mrf.mxu0 }
 0x4e2   : > { %v780_v32 = vpack.c.bf16 %v547_v31, %v547_v31 }
 0x4e3   : > { %v832_v33 = vpop.f32.mrf.mxu0 }
 0x4e4   : > { %557 = vrot.lane.b32.xlu0 %v780_v32, %s902_s8 }
 0x4e5   : > { %v550_v0 = vpop.f32.mrf.mxu0 }
 0x4e7   : > { %v833_v34 = vpop.f32.mrf.mxu0 }
 0x4e9   : > { %v666_v35 = vpop.f32.mrf.mxu0 }
 0x4ea   : > { %v781_v36 = vpack.c.bf16 %v666_v35, %v666_v35 }
 0x4eb   : > { %v844_v37 = vpop.f32.mrf.mxu0 }
 0x4ec   : > { %676 = vrot.lane.b32.xlu1 %v781_v36, %s903_s9 }
 0x4ed   : > { %v669_v38 = vpop.f32.mrf.mxu0 }
 0x4ef   : > { %v845_v39 = vpop.f32.mrf.mxu0 }
 0x54e   : > { %v439_v40 = vpop.permute.xlu1 %438 }
 0x54f   : > { %442 = vst.msk [vmem:[%s988_s30] sm:$0xf] %vm441_vm4, %v439_v40 }
 0x556   : > { %v558_v41 = vpop.permute.xlu0 %557 }
 0x557   : > { %561 = vst.msk [vmem:[%s988_s30] sm:$0xf] %vm560_vm5, %v558_v41 }
 0x55e   : > { %v677_v42 = vpop.permute.xlu1 %676 }
 0x55f   : > { %680 = vst.msk [vmem:[%s988_s30] sm:$0xf] %vm679_vm6, %v677_v42 }
 0x560 PF: > { %s13_s12 = sadd.s32 1, %s890_s12  }
 0x561   : > { %p10_p4 = scmp.ge.s32.totalorder %s13_s12, 4  }
 0x563   :  { %12 = sbr.rel (!%p10_p4) target bundleno = 1 (0x1), region = 68 }

// kernel: decoder_forward.23
= control target key start
LH: loop header
LB: loop body
LE: loop exit
PB: predicated region body
PF: predicated region fallthrough
CT: control target
= control target key end

     0   :  { %v310_v0 = vmov 0.0   ;;  %vm311_vm0 = vmmov 0   ;;  %vm56_vm1 = vcmask 261120   ;;  %vm143_vm2 = vcmask 523264   ;;  %s413_s2 = inlined_call_operand.vmem [shape: bf16[32,64], index: 2, kind: input, shape index: {}]   ;;  %s414_s0 = inlined_call_operand.vmem [shape: f32[16,32], index: 0, kind: input, shape index: {}]   ;;  %s415_s4 = inlined_call_operand.vmem [shape: bf16[64,32], index: 4, kind: input, shape index: {}]   ;;  %s416_s3 = inlined_call_operand.vmem [shape: f32[1,64], index: 3, kind: input, shape index: {}]   ;;  %s417_s5 = inlined_call_operand.vmem [shape: f32[1,32], index: 5, kind: input, shape index: {}]   ;;  %s418_s1 = inlined_call_operand.vmem [shape: f32[16,1], index: 1, kind: input, shape index: {}]   ;;  %s419_s6 = inlined_call_operand.vmem [shape: f32[1,32], index: 6, kind: input, shape index: {}]   ;;  %s420_s7 = inlined_call_operand.vmem [shape: f32[1,32], index: 7, kind: input, shape index: {}]   ;;  %s421_s8 = inlined_call_operand.vmem [shape: f32[16,32], index: 8, kind: output, shape index: {}]  }
   0x1   :  { %275 = vmatprep.subr.bf16.mxu0 %v310_v0  ;;  %v300_v1 = vld [vmem:[%s413_s2 + $0x8] sm:$0xff]   ;;  %279 = vmatprep.mubr.msk.bf16.mxu0 %vm311_vm0, %v310_v0  ;;  %v301_v2 = vld [vmem:[%s413_s2] sm:$0xff]   ;;  %v302_v5 = vld [vmem:[%s415_s4 + $0x18] sm:$0xff]   ;;  %v312_v31 = vmov 0  }
   0x2   :  { %283 = vmatprep.subr.bf16.mxu1 %v310_v0  ;;  %291 = vmatprep.mubr.msk.bf16.mxu1 %vm311_vm0, %v310_v0  ;;  %v30_v3 = vld [vmem:[%s414_s0] sm:$0xff]  ;;  %v31_v4 = vld [vmem:[%s414_s0 + $0x8] sm:$0xff]  ;;  %v303_v7 = vld [vmem:[%s415_s4 + $0x10] sm:$0xff]  }
   0x3   :  { %276 = vmatpush3.bf16.msra.mxu0 %v300_v1  ;;  %v32_v6 = vpack.c.bf16 %v31_v4, %v30_v3  ;;  %284 = vmatpush3.bf16.msra.mxu1 %v302_v5  ;;  %v304_v8 = vld [vmem:[%s415_s4 + $0x8] sm:$0xff]   ;;  %v305_v9 = vld [vmem:[%s415_s4] sm:$0xff]  }
   0x4   :  { %277 = vmatprep.subr.bf16.mxu0 %v310_v0  ;;  %285 = vmatprep.subr.bf16.mxu1 %v310_v0  ;;  %v255_v10 = vld [vmem:[%s416_s3] ss:$0 sm:$0xff]  ;;  %v236_v43 = vld [vmem:[%s418_s1 + $0x8] sm:$0xff] }
   0x5   :  { %v259_v20 = vld [vmem:[%s417_s5] ss:$0 sm:$0xff]  ;;  %298 = vset.pattern.permute.xlu0 %v312_v31  ;;  %299 = vset.pattern.permute.xlu1 %v312_v31 }
   0x6   :  { %v235_v32 = vld [vmem:[%s418_s1] sm:$0xff] }
   0x7   :  { %278 = vmatpush3.bf16.msra.mxu0 %v301_v2  ;;  %286 = vmatpush3.bf16.msra.mxu1 %v303_v7  ;;  %v265_v51 = vld [vmem:[%s419_s6] ss:$0 sm:$0xff] }
   0x8   :  { %287 = vmatprep.subr.bf16.mxu1 %v310_v0  ;;  %v266_v53 = vld [vmem:[%s420_s7] ss:$0 sm:$0xff] }
   0xa   :  { %280 = vmatmul.mubr.msk.bf16.vlgmr.msra.gmra.mxu0 %vm56_vm1, %v32_v6 }
   0xb   :  { %288 = vmatpush3.bf16.msra.mxu1 %v304_v8 }
   0xc   :  { %289 = vmatprep.subr.bf16.mxu1 %v310_v0 }
   0xf   :  { %290 = vmatpush3.bf16.msra.mxu1 %v305_v9 }
  0xca   :  { %v94_v11 = vpop.f32.mrf.mxu0 }
  0xcb   :  { %v95_v13 = vadd.f32 %v255_v10, %v94_v11 }
  0xcc   :  { %v281_v12 = vpop.f32.mrf.mxu0 }
  0xcd   :  { %v101_v17 = vmax.f32 %v95_v13, 0.0 }
  0xce   :  { %v97_v14 = vpop.f32.mrf.mxu0 }
  0xcf   :  { %v98_v15 = vadd.f32 %v255_v10, %v97_v14 }
  0xd0   :  { %v282_v16 = vpop.f32.mrf.mxu0 }
  0xd1   :  { %v102_v18 = vmax.f32 %v98_v15, 0.0 }
  0xd3   :  { %v103_v19 = vpack.c.bf16 %v102_v18, %v101_v17 }
  0xd5   :  { %292 = vmatmul.mubr.msk.bf16.vlgmr.msra.gmra.mxu1 %vm143_vm2, %v103_v19 }
 0x195   :  { %v181_v21 = vpop.f32.mrf.mxu1 }
 0x196   :  { %v182_v22 = vadd.f32 %v259_v20, %v181_v21 }
 0x197   :  { %v293_v23 = vpop.f32.mrf.mxu1 }
 0x198   :  { %v188_v24 = vadd.f32 %v182_v22, %v30_v3 }
 0x199   :  { %v184_v25 = vpop.f32.mrf.mxu1 }
 0x19a   :  { %v185_v26 = vadd.f32 %v259_v20, %v184_v25  ;;  %v190_v27 = vsel %vm56_vm1, %v188_v24, 0.0 }
 0x19b   :  { %191 = vadd.xlane.f32.xlu0 %v190_v27  ;;  %v294_v28 = vpop.f32.mrf.mxu1 }
 0x19c   :  { %v189_v29 = vadd.f32 %v185_v26, %v31_v4 }
 0x19e   :  { %v193_v30 = vsel %vm56_vm1, %v189_v29, 0.0 }
 0x19f   :  { %194 = vadd.xlane.f32.xlu0 %v193_v30 }
 0x1b5   :  { %239 = vperm.xlu0 %298, %v235_v32  }
 0x224   :  { %v192_v33 = vpop.xlane.xlu0 %191 }
 0x225   :  { %v197_v34 = vmul.f32 0.03125, %v192_v33 }
 0x227   :  { %v199_v35 = vsub.f32 %v188_v24, %v197_v34 }
 0x228   :  { %v195_v36 = vpop.xlane.xlu0 %194 }
 0x229   :  { %v198_v37 = vmul.f32 0.03125, %v195_v36  ;;  %v201_v38 = vmul.f32 %v199_v35, %v199_v35 }
 0x22b   :  { %v200_v39 = vsub.f32 %v189_v29, %v198_v37  ;;  %v203_v40 = vsel %vm56_vm1, %v201_v38, 0.0 }
 0x22c   :  { %204 = vadd.xlane.f32.xlu1 %v203_v40 }
 0x22d   :  { %v202_v41 = vmul.f32 %v200_v39, %v200_v39 }
 0x22f   :  { %v206_v42 = vsel %vm56_vm1, %v202_v41, 0.0 }
 0x230   :  { %207 = vadd.xlane.f32.xlu1 %v206_v42  ;;  %v240_v56 = vpop.permute.xlu0 %239 }
 0x241   :  { %244 = vperm.xlu1 %299, %v236_v43  }
 0x2b5   :  { %v205_v44 = vpop.xlane.xlu1 %204 }
 0x2b6   :  { %v209_v45 = vmul.f32 0.03125, %v205_v44 }
 0x2b8   :  { %v211_v46 = vadd.f32 1e-06, %v209_v45 }
 0x2b9   :  { %v208_v47 = vpop.xlane.xlu1 %207 }
 0x2ba   :  { %306 = vrsqrt.f32 %v211_v46  ;;  %v210_v48 = vmul.f32 0.03125, %v208_v47 }
 0x2bc   :  { %v212_v49 = vadd.f32 1e-06, %v210_v48 }
 0x2bd   :  { %v245_v61 = vpop.permute.xlu1 %244 }
 0x2be   :  { %308 = vrsqrt.f32 %v212_v49 }
 0x2c7   :  { %v307_v50 = vpop.eup %306 }
 0x2c8   :  { %v215_v52 = vmul.f32 %v307_v50, %v199_v35 }
 0x2ca   :  { %v224_v54 = vmul.f32 %v265_v51, %v215_v52 }
 0x2cb   :  { %v309_v55 = vpop.eup %308 }
 0x2cc   :  { %v233_v57 = vadd.f32 %v266_v53, %v224_v54  ;;  %v216_v58 = vmul.f32 %v309_v55, %v200_v39 }
 0x2ce   :  { %v247_v59 = vmul.f32 %v240_v56, %v233_v57  ;;  %v225_v60 = vmul.f32 %v265_v51, %v216_v58 }
 0x2d0   :  { %249 = vst.msk [vmem:[%s421_s8] sm:$0xff] %vm56_vm1, %v247_v59  ;;  %v234_v62 = vadd.f32 %v266_v53, %v225_v60 }
 0x2d2   :  { %v248_v63 = vmul.f32 %v245_v61, %v234_v62 }
 0x2d4   :  { %250 = vst.msk [vmem:[%s421_s8 + $0x8] sm:$0xff] %vm56_vm1, %v248_v63 }

// kernel: decoder_forward.31
= control target key start
LH: loop header
LB: loop body
LE: loop exit
PB: predicated region body
PF: predicated region fallthrough
CT: control target
= control target key end

     0   :  { %v348_v1 = vmov 0.0   ;;  %vm349_vm0 = vmmov 0   ;;  %vm57_vm1 = vcmask 261120   ;;  %s451_s0 = inlined_call_operand.vmem [shape: f32[16,32], index: 0, kind: input, shape index: {}]   ;;  %s452_s1 = inlined_call_operand.vmem [shape: f32[16,1], index: 1, kind: input, shape index: {}]   ;;  %s453_s2 = inlined_call_operand.vmem [shape: bf16[32,64], index: 2, kind: input, shape index: {}]   ;;  %s454_s3 = inlined_call_operand.vmem [shape: f32[1,64], index: 3, kind: input, shape index: {}]   ;;  %s455_s4 = inlined_call_operand.vmem [shape: bf16[64,32], index: 4, kind: input, shape index: {}]   ;;  %s456_s5 = inlined_call_operand.vmem [shape: f32[1,32], index: 5, kind: input, shape index: {}]   ;;  %s457_s6 = inlined_call_operand.vmem [shape: f32[1,32], index: 6, kind: input, shape index: {}]   ;;  %s458_s7 = inlined_call_operand.vmem [shape: f32[1,32], index: 7, kind: input, shape index: {}]   ;;  %s459_s8 = inlined_call_operand.hbm [shape: f32[16,32], index: 8, kind: output, shape index: {}]  }
   0x1   :  { %v316_v0 = vld [vmem:[%s453_s2 + $0x8] sm:$0xff]   ;;  %288 = vmatprep.subr.bf16.mxu0 %v348_v1  ;;  %v317_v2 = vld [vmem:[%s453_s2] sm:$0xff]   ;;  %296 = vmatprep.subr.bf16.mxu1 %v348_v1  ;;  %v318_v5 = vld [vmem:[%s455_s4 + $0x18] sm:$0xff]  }
   0x2   :  { %289 = vmatpush3.bf16.msra.mxu0 %v316_v0  ;;  %292 = vmatprep.mubr.msk.bf16.mxu0 %vm349_vm0, %v348_v1  ;;  %v31_v3 = vld [vmem:[%s451_s0] sm:$0xff]  ;;  %v32_v4 = vld [vmem:[%s451_s0 + $0x8] sm:$0xff] }
   0x3   :  { %290 = vmatprep.subr.bf16.mxu0 %v348_v1  ;;  %304 = vmatprep.mubr.msk.bf16.mxu1 %vm349_vm0, %v348_v1  ;;  %v33_v6 = vpack.c.bf16 %v32_v4, %v31_v3 }
   0x4   :  { %297 = vmatpush3.bf16.msra.mxu1 %v318_v5 }
   0x5   :  { %298 = vmatprep.subr.bf16.mxu1 %v348_v1 }
   0x6   :  { %291 = vmatpush3.bf16.msra.mxu0 %v317_v2 }
   0x7   :  { %13 = vsyncpa [#allocation3], 0  ;;  %v319_v7 = vld [vmem:[%s455_s4 + $0x10] sm:$0xff]   ;;  %v320_v8 = vld [vmem:[%s455_s4 + $0x8] sm:$0xff]   ;;  %vm144_vm2 = vcmask 523264   ;;  %v350_v31 = vmov 0  }
   0x8   :  { %299 = vmatpush3.bf16.msra.mxu1 %v319_v7  ;;  %v321_v9 = vld [vmem:[%s455_s4] sm:$0xff]   ;;  %314 = vset.pattern.permute.xlu0 %v350_v31  ;;  %v237_v43 = vld [vmem:[%s452_s1 + $0x8] sm:$0xff] }
   0x9   :  { %293 = vmatmul.mubr.msk.bf16.vlgmr.msra.gmra.mxu0 %vm57_vm1, %v33_v6  ;;  %300 = vmatprep.subr.bf16.mxu1 %v348_v1  ;;  %v268_v10 = vld [vmem:[%s454_s3] ss:$0 sm:$0xff] }
   0xa   :  { %v272_v20 = vld [vmem:[%s456_s5] ss:$0 sm:$0xff]  ;;  %315 = vset.pattern.permute.xlu1 %v350_v31 }
   0xb   :  { %v236_v32 = vld [vmem:[%s452_s1] sm:$0xff]  ;;  %s351_s1 = smov [#allocation2]  }
   0xc   :  { %301 = vmatpush3.bf16.msra.mxu1 %v320_v8  ;;  %v278_v51 = vld [vmem:[%s457_s6] ss:$0 sm:$0xff]  ;;  %s257_s28 = sshll.u32 %s351_s1, 4  ;;  %s258_s28 = int_to_ptr.vmem [resolvable:$true] %s257_s28 }
   0xd   :  { %302 = vmatprep.subr.bf16.mxu1 %v348_v1  ;;  %v279_v53 = vld [vmem:[%s458_s7] ss:$0 sm:$0xff]  ;;  %s326_s6 = scalar_lea.vmem %s258_s28, 256  ;;  %p331_p1 = scmp.lt.s32.totalorder %s258_s28, %s258_s28 }
   0xe   :  { %p327_p0 = scmp.ne.s32.totalorder %s258_s28, %s326_s6  ;;  %p332_p2 = scmp.lt.s32.totalorder %s326_s6, %s326_s6 }
  0x10   :  { %303 = vmatpush3.bf16.msra.mxu1 %v321_v9  ;;  %p333_p3 = por %p332_p2, %p331_p1 }
  0x12   :  { %p334_p4 = pnand %p333_p3, %p327_p0 }
  0xc9   :  { %v95_v11 = vpop.f32.mrf.mxu0 }
  0xca   :  { %v96_v13 = vadd.f32 %v268_v10, %v95_v11 }
  0xcb   :  { %v294_v12 = vpop.f32.mrf.mxu0 }
  0xcc   :  { %v102_v17 = vmax.f32 %v96_v13, 0.0 }
  0xcd   :  { %v98_v14 = vpop.f32.mrf.mxu0 }
  0xce   :  { %v99_v15 = vadd.f32 %v268_v10, %v98_v14 }
  0xcf   :  { %v295_v16 = vpop.f32.mrf.mxu0 }
  0xd0   :  { %v103_v18 = vmax.f32 %v99_v15, 0.0 }
  0xd2   :  { %v104_v19 = vpack.c.bf16 %v103_v18, %v102_v17 }
  0xd4   :  { %305 = vmatmul.mubr.msk.bf16.vlgmr.msra.gmra.mxu1 %vm144_vm2, %v104_v19 }
 0x194   :  { %v182_v21 = vpop.f32.mrf.mxu1 }
 0x195   :  { %v183_v22 = vadd.f32 %v272_v20, %v182_v21 }
 0x196   :  { %v306_v23 = vpop.f32.mrf.mxu1 }
 0x197   :  { %v189_v24 = vadd.f32 %v183_v22, %v31_v3 }
 0x198   :  { %v185_v25 = vpop.f32.mrf.mxu1 }
 0x199   :  { %v186_v26 = vadd.f32 %v272_v20, %v185_v25  ;;  %v191_v27 = vsel %vm57_vm1, %v189_v24, 0.0 }
 0x19a   :  { %192 = vadd.xlane.f32.xlu0 %v191_v27  ;;  %v307_v28 = vpop.f32.mrf.mxu1 }
 0x19b   :  { %v190_v29 = vadd.f32 %v186_v26, %v32_v4 }
 0x19d   :  { %v194_v30 = vsel %vm57_vm1, %v190_v29, 0.0 }
 0x19e   :  { %195 = vadd.xlane.f32.xlu0 %v194_v30 }
 0x1b4   :  { %240 = vperm.xlu0 %314, %v236_v32  }
 0x223   :  { %v193_v33 = vpop.xlane.xlu0 %192 }
 0x224   :  { %v198_v34 = vmul.f32 0.03125, %v193_v33 }
 0x226   :  { %v200_v35 = vsub.f32 %v189_v24, %v198_v34 }
 0x227   :  { %v196_v36 = vpop.xlane.xlu0 %195 }
 0x228   :  { %v199_v37 = vmul.f32 0.03125, %v196_v36  ;;  %v202_v38 = vmul.f32 %v200_v35, %v200_v35 }
 0x22a   :  { %v201_v39 = vsub.f32 %v190_v29, %v199_v37  ;;  %v204_v40 = vsel %vm57_vm1, %v202_v38, 0.0 }
 0x22b   :  { %205 = vadd.xlane.f32.xlu1 %v204_v40 }
 0x22c   :  { %v203_v41 = vmul.f32 %v201_v39, %v201_v39 }
 0x22e   :  { %v207_v42 = vsel %vm57_vm1, %v203_v41, 0.0 }
 0x22f   :  { %208 = vadd.xlane.f32.xlu1 %v207_v42  ;;  %v241_v56 = vpop.permute.xlu0 %240 }
 0x240   :  { %245 = vperm.xlu1 %315, %v237_v43  }
 0x2b4   :  { %v206_v44 = vpop.xlane.xlu1 %205 }
 0x2b5   :  { %v210_v45 = vmul.f32 0.03125, %v206_v44 }
 0x2b7   :  { %v212_v46 = vadd.f32 1e-06, %v210_v45 }
 0x2b8   :  { %v209_v47 = vpop.xlane.xlu1 %208 }
 0x2b9   :  { %322 = vrsqrt.f32 %v212_v46  ;;  %v211_v48 = vmul.f32 0.03125, %v209_v47 }
 0x2bb   :  { %v213_v49 = vadd.f32 1e-06, %v211_v48 }
 0x2bc   :  { %v246_v61 = vpop.permute.xlu1 %245 }
 0x2bd   :  { %324 = vrsqrt.f32 %v213_v49 }
 0x2c6   :  { %v323_v50 = vpop.eup %322 }
 0x2c7   :  { %v216_v52 = vmul.f32 %v323_v50, %v200_v35 }
 0x2c9   :  { %v225_v54 = vmul.f32 %v278_v51, %v216_v52 }
 0x2ca   :  { %v325_v55 = vpop.eup %324 }
 0x2cb   :  { %v234_v57 = vadd.f32 %v279_v53, %v225_v54  ;;  %v217_v58 = vmul.f32 %v325_v55, %v201_v39 }
 0x2cd   :  { %v248_v59 = vmul.f32 %v241_v56, %v234_v57  ;;  %v226_v60 = vmul.f32 %v278_v51, %v217_v58 }
 0x2cf   :  { %250 = vst.msk [vmem:[#allocation2] sm:$0xff] %vm57_vm1, %v248_v59  ;;  %v235_v62 = vadd.f32 %v279_v53, %v226_v60 }
 0x2d1   :  { %v249_v63 = vmul.f32 %v246_v61, %v235_v62 }
 0x2d3   :  { %251 = vst.msk [vmem:[#allocation2 + $0x8] sm:$0xff] %vm57_vm1, %v249_v63 }
 0x2d4   :  { %337 = shalt.err (!%p334_p4)
}
 0x2d5   :  { %s352_s7 = smov 128   ;;  %s353_s29 = smov 8  }
 0x2d6   :  { %263 = dma.vmem_to_hbm [thread:$0]  %s258_s28, 256, %s459_s8, [#allocation3], %s352_s7, %s352_s7, %s353_s29  }
 0x2d7   :  { %346 = dma.done.wait [#allocation3], 256  }
 0x2d8   :  { %347 = vsyncadd [#allocation3], 4294967040 }
 0x2d9   :  { %267 = vsyncpa [#allocation3], 1 }

</bundles_post_ra>
